<compile_context>
chip_gen: v6e
topology: v6e:2x2x1
jax: 0.10.0
libtpu: 0.0.40
codegen_flags: <defaults>
</compile_context>

<pallas_src>
import math

import jax
import jax.numpy as jnp
from jax import lax
from jax.experimental import pallas as pl
from jax.experimental.pallas import tpu as pltpu


# ----------------------------------------------------------------------------
# Fused dilated-conv + folded-BatchNorm + ReLU kernel (one batch per grid step)
# ----------------------------------------------------------------------------

def _make_kernel(H, W, C, Cout):
    S = H * W

    def kernel(x_ref, w_ref, scale_ref, bias_ref, mask_l_ref, mask_r_ref, o_ref):
        # x_ref:      (1, C, Spad) f32  one batch; rows padded by 2 top/bottom,
        #                                (H+4, W) flattened onto lanes, plus 2
        #                                extra zeros each end so every tap slice
        #                                stays in-bounds.
        # w_ref:      (3, 3, Cout, C) f32  conv taps
        # scale_ref:  (Cout, 1) f32  folded BN scale = gamma / sqrt(var + eps)
        # bias_ref:   (Cout, 1) f32  folded BN bias  = beta - mean * scale
        # mask_l/r:   (1, S) f32  column masks for the kw=0 / kw=2 taps
        # o_ref:      (1, Cout, S) f32
        acc = jnp.zeros((Cout, S), jnp.float32)
        for kh in range(3):
            for kw in range(3):
                off = 2 * kh * W + 2 * kw                 # static lane offset
                tap = x_ref[0, :, pl.ds(off, S)]          # (C, S)
                if kw == 0:
                    tap = tap * mask_l_ref[...]           # zero cols that wrapped left
                elif kw == 2:
                    tap = tap * mask_r_ref[...]           # zero cols that wrapped right
                wk = w_ref[kh, kw]                        # (Cout, C)
                if C <= 16:
                    # Tiny C: unrolled VPU multiply-adds; MXU would be <1% utilized.
                    for ci in range(C):
                        acc = acc + wk[:, ci:ci + 1] * tap[ci:ci + 1, :]
                else:
                    acc = acc + jnp.dot(wk, tap, preferred_element_type=jnp.float32)
        y = acc * scale_ref[...] + bias_ref[...]
        o_ref[0] = jnp.maximum(y, 0.0)

    return kernel


# ----------------------------------------------------------------------------
# ConvBlock forward
# ----------------------------------------------------------------------------

def conv_block_forward(x, conv_w, bn_gamma, bn_beta, bn_mean, bn_var, eps=1e-5):
    """x: (B, C, H, W) fp32, conv_w: (Cout, Cin, 3, 3).  Returns (B, Cout, H, W)."""
    B, C, H, W = x.shape
    Cout, Cin, KH, KW = conv_w.shape
    assert (KH, KW) == (3, 3) and Cin == C

    S = H * W
    halo = 2 * W + 2                      # 2 zero rows + 2 zero cols at each end
    Spad = S + 2 * halo

    # Flatten spatial onto the lane axis and zero-pad (contiguous reshape is free;
    # the pad is the only remaining wrapper-side HBM pass on the input).
    xf = jnp.pad(x.astype(jnp.float32).reshape(B, C, S),
                 ((0, 0), (0, 0), (halo, halo)))          # (B, C, Spad)

    # Conv taps ordered (kh, kw, co, ci); fold inference BatchNorm into scale/bias.
    w4 = jnp.transpose(conv_w, (2, 3, 0, 1)).astype(jnp.float32)   # (3,3,Cout,Cin)
    inv_std = 1.0 / jnp.sqrt(bn_var.astype(jnp.float32) + eps)
    scale = (bn_gamma * inv_std).reshape(Cout, 1).astype(jnp.float32)
    bias = (bn_beta - bn_mean * bn_gamma * inv_std).reshape(Cout, 1).astype(jnp.float32)

    # Column masks: zero the columns that would wrap across the W border for the
    # left-shifted (kw=0) and right-shifted (kw=2) dilated taps.
    col = jnp.arange(S, dtype=jnp.int32) % W
    mask_l = (col >= 2).astype(jnp.float32).reshape(1, S)
    mask_r = (col < W - 2).astype(jnp.float32).reshape(1, S)

    block_bytes = 4 * (C * Spad + 9 * Cout * C + 2 * Cout + 2 * S + Cout * S)
    vmem_limit = int(min(64 * 2 ** 20, max(32 * 2 ** 20, 8 * block_bytes)))

    out = pl.pallas_call(
        _make_kernel(H, W, C, Cout),
        out_shape=jax.ShapeDtypeStruct((B, Cout, S), jnp.float32),
        grid=(B,),
        in_specs=[
            pl.BlockSpec((1, C, Spad), lambda b: (b, 0, 0)),
            pl.BlockSpec((3, 3, Cout, C), lambda b: (0, 0, 0, 0)),
            pl.BlockSpec((Cout, 1), lambda b: (0, 0)),
            pl.BlockSpec((Cout, 1), lambda b: (0, 0)),
            pl.BlockSpec((1, S), lambda b: (0, 0)),
            pl.BlockSpec((1, S), lambda b: (0, 0)),
        ],
        out_specs=pl.BlockSpec((1, Cout, S), lambda b: (b, 0, 0)),
        compiler_params=pltpu.CompilerParams(
            dimension_semantics=("parallel",),
            vmem_limit_bytes=vmem_limit),
    )(xf, w4, scale, bias, mask_l, mask_r)

    return out.reshape(B, Cout, H, W)                     # contiguous reshape, free


# ----------------------------------------------------------------------------
# main
# ----------------------------------------------------------------------------

if __name__ == "__main__":
    key = jax.random.PRNGKey(0)
    kx, kw, kg, kb, km, kv = jax.random.split(key, 6)

    B, C, H, W = 2, 4, 16, 16
    x = jax.random.normal(kx, (B, C, H, W), jnp.float32)

    # Conv2d default init: U(-1/sqrt(fan_in), 1/sqrt(fan_in)), bias=False per spec
    fan_in = C * 3 * 3
    bound = 1.0 / math.sqrt(fan_in)
    conv_w = jax.random.uniform(kw, (C, C, 3, 3), jnp.float32, -bound, bound)

    # BatchNorm2d parameters / running stats (inference-mode semantics)
    bn_gamma = 1.0 + 0.1 * jax.random.normal(kg, (C,), jnp.float32)
    bn_beta = 0.1 * jax.random.normal(kb, (C,), jnp.float32)
    bn_mean = 0.1 * jax.random.normal(km, (C,), jnp.float32)
    bn_var = jax.random.uniform(kv, (C,), jnp.float32, 0.5, 1.5)

    out = conv_block_forward(x, conv_w, bn_gamma, bn_beta, bn_mean, bn_var)
    out = jax.block_until_ready(out)

    # ---- fp32 reference: dilated conv -> inference BN -> ReLU ----
    y_ref = lax.conv_general_dilated(
        x, conv_w, window_strides=(1, 1), padding=((2, 2), (2, 2)),
        rhs_dilation=(2, 2), dimension_numbers=("NCHW", "OIHW", "NCHW"),
        precision=lax.Precision.HIGHEST)
    inv_std = 1.0 / jnp.sqrt(bn_var + 1e-5)
    y_ref = (y_ref - bn_mean[None, :, None, None]) * (bn_gamma * inv_std)[None, :, None, None] \
            + bn_beta[None, :, None, None]
    y_ref = jnp.maximum(y_ref, 0.0)

    assert out.shape == (B, C, H, W), out.shape
    assert out.dtype == jnp.float32
    assert bool(jnp.all(jnp.isfinite(out)))
    max_err = float(jnp.max(jnp.abs(out - y_ref)))
    assert bool(jnp.allclose(out, y_ref, atol=1e-4, rtol=1e-4)), f"max_err={max_err}"
    print("KERNEL_OK")
</pallas_src>

<mosaic_0001>
module attributes {stable_mosaic.version = 11 : i64} {
  func.func @kernel(%arg0: i32, %arg1: memref<1x4x324xf32, #tpu.memory_space<vmem>>, %arg2: memref<3x3x4x4xf32, #tpu.memory_space<vmem>>, %arg3: memref<4x1xf32, #tpu.memory_space<vmem>>, %arg4: memref<4x1xf32, #tpu.memory_space<vmem>>, %arg5: memref<1x256xf32, #tpu.memory_space<vmem>>, %arg6: memref<1x256xf32, #tpu.memory_space<vmem>>, %arg7: memref<1x4x256xf32, #tpu.memory_space<vmem>>) attributes {dimension_semantics = [#tpu.dimension_semantics<parallel>], iteration_bounds = array<i64: 2>, scalar_prefetch = 0 : i64, scratch_operands = 0 : i64, tpu.core_type = #tpu.core_type<tc>, window_params = [{transform_indices = @transform_0, window_bounds = array<i64: 1, 4, 324>}, {pipeline_mode = #tpu.pipeline_mode<synchronous>, transform_indices = @transform_1, window_bounds = array<i64: 3, 3, 4, 4>}, {pipeline_mode = #tpu.pipeline_mode<synchronous>, transform_indices = @transform_2, window_bounds = array<i64: 4, 1>}, {pipeline_mode = #tpu.pipeline_mode<synchronous>, transform_indices = @transform_3, window_bounds = array<i64: 4, 1>}, {pipeline_mode = #tpu.pipeline_mode<synchronous>, transform_indices = @transform_4, window_bounds = array<i64: 1, 256>}, {pipeline_mode = #tpu.pipeline_mode<synchronous>, transform_indices = @transform_5, window_bounds = array<i64: 1, 256>}, {transform_indices = @transform_6, window_bounds = array<i64: 1, 4, 256>}]} {
    %cst = arith.constant 0.000000e+00 : f32
    %0 = vector.broadcast %cst : f32 to vector<4x256xf32>
    %c0 = arith.constant 0 : index
    %c0_0 = arith.constant 0 : index
    %c0_1 = arith.constant 0 : index
    %1 = vector.load %arg1[%c0, %c0_0, %c0_1] : memref<1x4x324xf32, #tpu.memory_space<vmem>>, vector<1x4x256xf32>
    %2 = vector.shape_cast %1 : vector<1x4x256xf32> to vector<4x256xf32>
    %c0_2 = arith.constant 0 : index
    %c0_3 = arith.constant 0 : index
    %3 = vector.load %arg5[%c0_2, %c0_3] : memref<1x256xf32, #tpu.memory_space<vmem>>, vector<1x256xf32>
    %4 = vector.broadcast %3 : vector<1x256xf32> to vector<4x256xf32>
    %5 = arith.mulf %2, %4 : vector<4x256xf32>
    %c0_4 = arith.constant 0 : index
    %c0_5 = arith.constant 0 : index
    %c0_6 = arith.constant 0 : index
    %c0_7 = arith.constant 0 : index
    %6 = vector.load %arg2[%c0_4, %c0_5, %c0_6, %c0_7] : memref<3x3x4x4xf32, #tpu.memory_space<vmem>>, vector<1x1x4x4xf32>
    %7 = vector.shape_cast %6 : vector<1x1x4x4xf32> to vector<4x4xf32>
    %8 = vector.extract_strided_slice %7 {offsets = [0, 0], sizes = [4, 1], strides = [1, 1]} : vector<4x4xf32> to vector<4x1xf32>
    %9 = vector.extract_strided_slice %5 {offsets = [0, 0], sizes = [1, 256], strides = [1, 1]} : vector<4x256xf32> to vector<1x256xf32>
    %10 = vector.broadcast %8 : vector<4x1xf32> to vector<4x256xf32>
    %11 = vector.broadcast %9 : vector<1x256xf32> to vector<4x256xf32>
    %12 = arith.mulf %10, %11 : vector<4x256xf32>
    %13 = arith.addf %0, %12 : vector<4x256xf32>
    %14 = vector.extract_strided_slice %7 {offsets = [0, 1], sizes = [4, 1], strides = [1, 1]} : vector<4x4xf32> to vector<4x1xf32>
    %15 = vector.extract_strided_slice %5 {offsets = [1, 0], sizes = [1, 256], strides = [1, 1]} : vector<4x256xf32> to vector<1x256xf32>
    %16 = vector.broadcast %14 : vector<4x1xf32> to vector<4x256xf32>
    %17 = vector.broadcast %15 : vector<1x256xf32> to vector<4x256xf32>
    %18 = arith.mulf %16, %17 : vector<4x256xf32>
    %19 = arith.addf %13, %18 : vector<4x256xf32>
    %20 = vector.extract_strided_slice %7 {offsets = [0, 2], sizes = [4, 1], strides = [1, 1]} : vector<4x4xf32> to vector<4x1xf32>
    %21 = vector.extract_strided_slice %5 {offsets = [2, 0], sizes = [1, 256], strides = [1, 1]} : vector<4x256xf32> to vector<1x256xf32>
    %22 = vector.broadcast %20 : vector<4x1xf32> to vector<4x256xf32>
    %23 = vector.broadcast %21 : vector<1x256xf32> to vector<4x256xf32>
    %24 = arith.mulf %22, %23 : vector<4x256xf32>
    %25 = arith.addf %19, %24 : vector<4x256xf32>
    %26 = vector.extract_strided_slice %7 {offsets = [0, 3], sizes = [4, 1], strides = [1, 1]} : vector<4x4xf32> to vector<4x1xf32>
    %27 = vector.extract_strided_slice %5 {offsets = [3, 0], sizes = [1, 256], strides = [1, 1]} : vector<4x256xf32> to vector<1x256xf32>
    %28 = vector.broadcast %26 : vector<4x1xf32> to vector<4x256xf32>
    %29 = vector.broadcast %27 : vector<1x256xf32> to vector<4x256xf32>
    %30 = arith.mulf %28, %29 : vector<4x256xf32>
    %31 = arith.addf %25, %30 : vector<4x256xf32>
    %c0_8 = arith.constant 0 : index
    %c0_9 = arith.constant 0 : index
    %c2 = arith.constant 2 : index
    %32 = vector.load %arg1[%c0_8, %c0_9, %c2] : memref<1x4x324xf32, #tpu.memory_space<vmem>>, vector<1x4x256xf32>
    %33 = vector.shape_cast %32 : vector<1x4x256xf32> to vector<4x256xf32>
    %c0_10 = arith.constant 0 : index
    %c1 = arith.constant 1 : index
    %c0_11 = arith.constant 0 : index
    %c0_12 = arith.constant 0 : index
    %34 = vector.load %arg2[%c0_10, %c1, %c0_11, %c0_12] : memref<3x3x4x4xf32, #tpu.memory_space<vmem>>, vector<1x1x4x4xf32>
    %35 = vector.shape_cast %34 : vector<1x1x4x4xf32> to vector<4x4xf32>
    %36 = vector.extract_strided_slice %35 {offsets = [0, 0], sizes = [4, 1], strides = [1, 1]} : vector<4x4xf32> to vector<4x1xf32>
    %37 = vector.extract_strided_slice %33 {offsets = [0, 0], sizes = [1, 256], strides = [1, 1]} : vector<4x256xf32> to vector<1x256xf32>
    %38 = vector.broadcast %36 : vector<4x1xf32> to vector<4x256xf32>
    %39 = vector.broadcast %37 : vector<1x256xf32> to vector<4x256xf32>
    %40 = arith.mulf %38, %39 : vector<4x256xf32>
    %41 = arith.addf %31, %40 : vector<4x256xf32>
    %42 = vector.extract_strided_slice %35 {offsets = [0, 1], sizes = [4, 1], strides = [1, 1]} : vector<4x4xf32> to vector<4x1xf32>
    %43 = vector.extract_strided_slice %33 {offsets = [1, 0], sizes = [1, 256], strides = [1, 1]} : vector<4x256xf32> to vector<1x256xf32>
    %44 = vector.broadcast %42 : vector<4x1xf32> to vector<4x256xf32>
    %45 = vector.broadcast %43 : vector<1x256xf32> to vector<4x256xf32>
    %46 = arith.mulf %44, %45 : vector<4x256xf32>
    %47 = arith.addf %41, %46 : vector<4x256xf32>
    %48 = vector.extract_strided_slice %35 {offsets = [0, 2], sizes = [4, 1], strides = [1, 1]} : vector<4x4xf32> to vector<4x1xf32>
    %49 = vector.extract_strided_slice %33 {offsets = [2, 0], sizes = [1, 256], strides = [1, 1]} : vector<4x256xf32> to vector<1x256xf32>
    %50 = vector.broadcast %48 : vector<4x1xf32> to vector<4x256xf32>
    %51 = vector.broadcast %49 : vector<1x256xf32> to vector<4x256xf32>
    %52 = arith.mulf %50, %51 : vector<4x256xf32>
    %53 = arith.addf %47, %52 : vector<4x256xf32>
    %54 = vector.extract_strided_slice %35 {offsets = [0, 3], sizes = [4, 1], strides = [1, 1]} : vector<4x4xf32> to vector<4x1xf32>
    %55 = vector.extract_strided_slice %33 {offsets = [3, 0], sizes = [1, 256], strides = [1, 1]} : vector<4x256xf32> to vector<1x256xf32>
    %56 = vector.broadcast %54 : vector<4x1xf32> to vector<4x256xf32>
    %57 = vector.broadcast %55 : vector<1x256xf32> to vector<4x256xf32>
    %58 = arith.mulf %56, %57 : vector<4x256xf32>
    %59 = arith.addf %53, %58 : vector<4x256xf32>
    %c0_13 = arith.constant 0 : index
    %c0_14 = arith.constant 0 : index
    %c4 = arith.constant 4 : index
    %60 = vector.load %arg1[%c0_13, %c0_14, %c4] : memref<1x4x324xf32, #tpu.memory_space<vmem>>, vector<1x4x256xf32>
    %61 = vector.shape_cast %60 : vector<1x4x256xf32> to vector<4x256xf32>
    %c0_15 = arith.constant 0 : index
    %c0_16 = arith.constant 0 : index
    %62 = vector.load %arg6[%c0_15, %c0_16] : memref<1x256xf32, #tpu.memory_space<vmem>>, vector<1x256xf32>
    %63 = vector.broadcast %62 : vector<1x256xf32> to vector<4x256xf32>
    %64 = arith.mulf %61, %63 : vector<4x256xf32>
    %c0_17 = arith.constant 0 : index
    %c2_18 = arith.constant 2 : index
    %c0_19 = arith.constant 0 : index
    %c0_20 = arith.constant 0 : index
    %65 = vector.load %arg2[%c0_17, %c2_18, %c0_19, %c0_20] : memref<3x3x4x4xf32, #tpu.memory_space<vmem>>, vector<1x1x4x4xf32>
    %66 = vector.shape_cast %65 : vector<1x1x4x4xf32> to vector<4x4xf32>
    %67 = vector.extract_strided_slice %66 {offsets = [0, 0], sizes = [4, 1], strides = [1, 1]} : vector<4x4xf32> to vector<4x1xf32>
    %68 = vector.extract_strided_slice %64 {offsets = [0, 0], sizes = [1, 256], strides = [1, 1]} : vector<4x256xf32> to vector<1x256xf32>
    %69 = vector.broadcast %67 : vector<4x1xf32> to vector<4x256xf32>
    %70 = vector.broadcast %68 : vector<1x256xf32> to vector<4x256xf32>
    %71 = arith.mulf %69, %70 : vector<4x256xf32>
    %72 = arith.addf %59, %71 : vector<4x256xf32>
    %73 = vector.extract_strided_slice %66 {offsets = [0, 1], sizes = [4, 1], strides = [1, 1]} : vector<4x4xf32> to vector<4x1xf32>
    %74 = vector.extract_strided_slice %64 {offsets = [1, 0], sizes = [1, 256], strides = [1, 1]} : vector<4x256xf32> to vector<1x256xf32>
    %75 = vector.broadcast %73 : vector<4x1xf32> to vector<4x256xf32>
    %76 = vector.broadcast %74 : vector<1x256xf32> to vector<4x256xf32>
    %77 = arith.mulf %75, %76 : vector<4x256xf32>
    %78 = arith.addf %72, %77 : vector<4x256xf32>
    %79 = vector.extract_strided_slice %66 {offsets = [0, 2], sizes = [4, 1], strides = [1, 1]} : vector<4x4xf32> to vector<4x1xf32>
    %80 = vector.extract_strided_slice %64 {offsets = [2, 0], sizes = [1, 256], strides = [1, 1]} : vector<4x256xf32> to vector<1x256xf32>
    %81 = vector.broadcast %79 : vector<4x1xf32> to vector<4x256xf32>
    %82 = vector.broadcast %80 : vector<1x256xf32> to vector<4x256xf32>
    %83 = arith.mulf %81, %82 : vector<4x256xf32>
    %84 = arith.addf %78, %83 : vector<4x256xf32>
    %85 = vector.extract_strided_slice %66 {offsets = [0, 3], sizes = [4, 1], strides = [1, 1]} : vector<4x4xf32> to vector<4x1xf32>
    %86 = vector.extract_strided_slice %64 {offsets = [3, 0], sizes = [1, 256], strides = [1, 1]} : vector<4x256xf32> to vector<1x256xf32>
    %87 = vector.broadcast %85 : vector<4x1xf32> to vector<4x256xf32>
    %88 = vector.broadcast %86 : vector<1x256xf32> to vector<4x256xf32>
    %89 = arith.mulf %87, %88 : vector<4x256xf32>
    %90 = arith.addf %84, %89 : vector<4x256xf32>
    %c0_21 = arith.constant 0 : index
    %c0_22 = arith.constant 0 : index
    %c32 = arith.constant 32 : index
    %91 = vector.load %arg1[%c0_21, %c0_22, %c32] : memref<1x4x324xf32, #tpu.memory_space<vmem>>, vector<1x4x256xf32>
    %92 = vector.shape_cast %91 : vector<1x4x256xf32> to vector<4x256xf32>
    %c0_23 = arith.constant 0 : index
    %c0_24 = arith.constant 0 : index
    %93 = vector.load %arg5[%c0_23, %c0_24] : memref<1x256xf32, #tpu.memory_space<vmem>>, vector<1x256xf32>
    %94 = vector.broadcast %93 : vector<1x256xf32> to vector<4x256xf32>
    %95 = arith.mulf %92, %94 : vector<4x256xf32>
    %c1_25 = arith.constant 1 : index
    %c0_26 = arith.constant 0 : index
    %c0_27 = arith.constant 0 : index
    %c0_28 = arith.constant 0 : index
    %96 = vector.load %arg2[%c1_25, %c0_26, %c0_27, %c0_28] : memref<3x3x4x4xf32, #tpu.memory_space<vmem>>, vector<1x1x4x4xf32>
    %97 = vector.shape_cast %96 : vector<1x1x4x4xf32> to vector<4x4xf32>
    %98 = vector.extract_strided_slice %97 {offsets = [0, 0], sizes = [4, 1], strides = [1, 1]} : vector<4x4xf32> to vector<4x1xf32>
    %99 = vector.extract_strided_slice %95 {offsets = [0, 0], sizes = [1, 256], strides = [1, 1]} : vector<4x256xf32> to vector<1x256xf32>
    %100 = vector.broadcast %98 : vector<4x1xf32> to vector<4x256xf32>
    %101 = vector.broadcast %99 : vector<1x256xf32> to vector<4x256xf32>
    %102 = arith.mulf %100, %101 : vector<4x256xf32>
    %103 = arith.addf %90, %102 : vector<4x256xf32>
    %104 = vector.extract_strided_slice %97 {offsets = [0, 1], sizes = [4, 1], strides = [1, 1]} : vector<4x4xf32> to vector<4x1xf32>
    %105 = vector.extract_strided_slice %95 {offsets = [1, 0], sizes = [1, 256], strides = [1, 1]} : vector<4x256xf32> to vector<1x256xf32>
    %106 = vector.broadcast %104 : vector<4x1xf32> to vector<4x256xf32>
    %107 = vector.broadcast %105 : vector<1x256xf32> to vector<4x256xf32>
    %108 = arith.mulf %106, %107 : vector<4x256xf32>
    %109 = arith.addf %103, %108 : vector<4x256xf32>
    %110 = vector.extract_strided_slice %97 {offsets = [0, 2], sizes = [4, 1], strides = [1, 1]} : vector<4x4xf32> to vector<4x1xf32>
    %111 = vector.extract_strided_slice %95 {offsets = [2, 0], sizes = [1, 256], strides = [1, 1]} : vector<4x256xf32> to vector<1x256xf32>
    %112 = vector.broadcast %110 : vector<4x1xf32> to vector<4x256xf32>
    %113 = vector.broadcast %111 : vector<1x256xf32> to vector<4x256xf32>
    %114 = arith.mulf %112, %113 : vector<4x256xf32>
    %115 = arith.addf %109, %114 : vector<4x256xf32>
    %116 = vector.extract_strided_slice %97 {offsets = [0, 3], sizes = [4, 1], strides = [1, 1]} : vector<4x4xf32> to vector<4x1xf32>
    %117 = vector.extract_strided_slice %95 {offsets = [3, 0], sizes = [1, 256], strides = [1, 1]} : vector<4x256xf32> to vector<1x256xf32>
    %118 = vector.broadcast %116 : vector<4x1xf32> to vector<4x256xf32>
    %119 = vector.broadcast %117 : vector<1x256xf32> to vector<4x256xf32>
    %120 = arith.mulf %118, %119 : vector<4x256xf32>
    %121 = arith.addf %115, %120 : vector<4x256xf32>
    %c0_29 = arith.constant 0 : index
    %c0_30 = arith.constant 0 : index
    %c34 = arith.constant 34 : index
    %122 = vector.load %arg1[%c0_29, %c0_30, %c34] : memref<1x4x324xf32, #tpu.memory_space<vmem>>, vector<1x4x256xf32>
    %123 = vector.shape_cast %122 : vector<1x4x256xf32> to vector<4x256xf32>
    %c1_31 = arith.constant 1 : index
    %c1_32 = arith.constant 1 : index
    %c0_33 = arith.constant 0 : index
    %c0_34 = arith.constant 0 : index
    %124 = vector.load %arg2[%c1_31, %c1_32, %c0_33, %c0_34] : memref<3x3x4x4xf32, #tpu.memory_space<vmem>>, vector<1x1x4x4xf32>
    %125 = vector.shape_cast %124 : vector<1x1x4x4xf32> to vector<4x4xf32>
    %126 = vector.extract_strided_slice %125 {offsets = [0, 0], sizes = [4, 1], strides = [1, 1]} : vector<4x4xf32> to vector<4x1xf32>
    %127 = vector.extract_strided_slice %123 {offsets = [0, 0], sizes = [1, 256], strides = [1, 1]} : vector<4x256xf32> to vector<1x256xf32>
    %128 = vector.broadcast %126 : vector<4x1xf32> to vector<4x256xf32>
    %129 = vector.broadcast %127 : vector<1x256xf32> to vector<4x256xf32>
    %130 = arith.mulf %128, %129 : vector<4x256xf32>
    %131 = arith.addf %121, %130 : vector<4x256xf32>
    %132 = vector.extract_strided_slice %125 {offsets = [0, 1], sizes = [4, 1], strides = [1, 1]} : vector<4x4xf32> to vector<4x1xf32>
    %133 = vector.extract_strided_slice %123 {offsets = [1, 0], sizes = [1, 256], strides = [1, 1]} : vector<4x256xf32> to vector<1x256xf32>
    %134 = vector.broadcast %132 : vector<4x1xf32> to vector<4x256xf32>
    %135 = vector.broadcast %133 : vector<1x256xf32> to vector<4x256xf32>
    %136 = arith.mulf %134, %135 : vector<4x256xf32>
    %137 = arith.addf %131, %136 : vector<4x256xf32>
    %138 = vector.extract_strided_slice %125 {offsets = [0, 2], sizes = [4, 1], strides = [1, 1]} : vector<4x4xf32> to vector<4x1xf32>
    %139 = vector.extract_strided_slice %123 {offsets = [2, 0], sizes = [1, 256], strides = [1, 1]} : vector<4x256xf32> to vector<1x256xf32>
    %140 = vector.broadcast %138 : vector<4x1xf32> to vector<4x256xf32>
    %141 = vector.broadcast %139 : vector<1x256xf32> to vector<4x256xf32>
    %142 = arith.mulf %140, %141 : vector<4x256xf32>
    %143 = arith.addf %137, %142 : vector<4x256xf32>
    %144 = vector.extract_strided_slice %125 {offsets = [0, 3], sizes = [4, 1], strides = [1, 1]} : vector<4x4xf32> to vector<4x1xf32>
    %145 = vector.extract_strided_slice %123 {offsets = [3, 0], sizes = [1, 256], strides = [1, 1]} : vector<4x256xf32> to vector<1x256xf32>
    %146 = vector.broadcast %144 : vector<4x1xf32> to vector<4x256xf32>
    %147 = vector.broadcast %145 : vector<1x256xf32> to vector<4x256xf32>
    %148 = arith.mulf %146, %147 : vector<4x256xf32>
    %149 = arith.addf %143, %148 : vector<4x256xf32>
    %c0_35 = arith.constant 0 : index
    %c0_36 = arith.constant 0 : index
    %c36 = arith.constant 36 : index
    %150 = vector.load %arg1[%c0_35, %c0_36, %c36] : memref<1x4x324xf32, #tpu.memory_space<vmem>>, vector<1x4x256xf32>
    %151 = vector.shape_cast %150 : vector<1x4x256xf32> to vector<4x256xf32>
    %c0_37 = arith.constant 0 : index
    %c0_38 = arith.constant 0 : index
    %152 = vector.load %arg6[%c0_37, %c0_38] : memref<1x256xf32, #tpu.memory_space<vmem>>, vector<1x256xf32>
    %153 = vector.broadcast %152 : vector<1x256xf32> to vector<4x256xf32>
    %154 = arith.mulf %151, %153 : vector<4x256xf32>
    %c1_39 = arith.constant 1 : index
    %c2_40 = arith.constant 2 : index
    %c0_41 = arith.constant 0 : index
    %c0_42 = arith.constant 0 : index
    %155 = vector.load %arg2[%c1_39, %c2_40, %c0_41, %c0_42] : memref<3x3x4x4xf32, #tpu.memory_space<vmem>>, vector<1x1x4x4xf32>
    %156 = vector.shape_cast %155 : vector<1x1x4x4xf32> to vector<4x4xf32>
    %157 = vector.extract_strided_slice %156 {offsets = [0, 0], sizes = [4, 1], strides = [1, 1]} : vector<4x4xf32> to vector<4x1xf32>
    %158 = vector.extract_strided_slice %154 {offsets = [0, 0], sizes = [1, 256], strides = [1, 1]} : vector<4x256xf32> to vector<1x256xf32>
    %159 = vector.broadcast %157 : vector<4x1xf32> to vector<4x256xf32>
    %160 = vector.broadcast %158 : vector<1x256xf32> to vector<4x256xf32>
    %161 = arith.mulf %159, %160 : vector<4x256xf32>
    %162 = arith.addf %149, %161 : vector<4x256xf32>
    %163 = vector.extract_strided_slice %156 {offsets = [0, 1], sizes = [4, 1], strides = [1, 1]} : vector<4x4xf32> to vector<4x1xf32>
    %164 = vector.extract_strided_slice %154 {offsets = [1, 0], sizes = [1, 256], strides = [1, 1]} : vector<4x256xf32> to vector<1x256xf32>
    %165 = vector.broadcast %163 : vector<4x1xf32> to vector<4x256xf32>
    %166 = vector.broadcast %164 : vector<1x256xf32> to vector<4x256xf32>
    %167 = arith.mulf %165, %166 : vector<4x256xf32>
    %168 = arith.addf %162, %167 : vector<4x256xf32>
    %169 = vector.extract_strided_slice %156 {offsets = [0, 2], sizes = [4, 1], strides = [1, 1]} : vector<4x4xf32> to vector<4x1xf32>
    %170 = vector.extract_strided_slice %154 {offsets = [2, 0], sizes = [1, 256], strides = [1, 1]} : vector<4x256xf32> to vector<1x256xf32>
    %171 = vector.broadcast %169 : vector<4x1xf32> to vector<4x256xf32>
    %172 = vector.broadcast %170 : vector<1x256xf32> to vector<4x256xf32>
    %173 = arith.mulf %171, %172 : vector<4x256xf32>
    %174 = arith.addf %168, %173 : vector<4x256xf32>
    %175 = vector.extract_strided_slice %156 {offsets = [0, 3], sizes = [4, 1], strides = [1, 1]} : vector<4x4xf32> to vector<4x1xf32>
    %176 = vector.extract_strided_slice %154 {offsets = [3, 0], sizes = [1, 256], strides = [1, 1]} : vector<4x256xf32> to vector<1x256xf32>
    %177 = vector.broadcast %175 : vector<4x1xf32> to vector<4x256xf32>
    %178 = vector.broadcast %176 : vector<1x256xf32> to vector<4x256xf32>
    %179 = arith.mulf %177, %178 : vector<4x256xf32>
    %180 = arith.addf %174, %179 : vector<4x256xf32>
    %c0_43 = arith.constant 0 : index
    %c0_44 = arith.constant 0 : index
    %c64 = arith.constant 64 : index
    %181 = vector.load %arg1[%c0_43, %c0_44, %c64] : memref<1x4x324xf32, #tpu.memory_space<vmem>>, vector<1x4x256xf32>
    %182 = vector.shape_cast %181 : vector<1x4x256xf32> to vector<4x256xf32>
    %c0_45 = arith.constant 0 : index
    %c0_46 = arith.constant 0 : index
    %183 = vector.load %arg5[%c0_45, %c0_46] : memref<1x256xf32, #tpu.memory_space<vmem>>, vector<1x256xf32>
    %184 = vector.broadcast %183 : vector<1x256xf32> to vector<4x256xf32>
    %185 = arith.mulf %182, %184 : vector<4x256xf32>
    %c2_47 = arith.constant 2 : index
    %c0_48 = arith.constant 0 : index
    %c0_49 = arith.constant 0 : index
    %c0_50 = arith.constant 0 : index
    %186 = vector.load %arg2[%c2_47, %c0_48, %c0_49, %c0_50] : memref<3x3x4x4xf32, #tpu.memory_space<vmem>>, vector<1x1x4x4xf32>
    %187 = vector.shape_cast %186 : vector<1x1x4x4xf32> to vector<4x4xf32>
    %188 = vector.extract_strided_slice %187 {offsets = [0, 0], sizes = [4, 1], strides = [1, 1]} : vector<4x4xf32> to vector<4x1xf32>
    %189 = vector.extract_strided_slice %185 {offsets = [0, 0], sizes = [1, 256], strides = [1, 1]} : vector<4x256xf32> to vector<1x256xf32>
    %190 = vector.broadcast %188 : vector<4x1xf32> to vector<4x256xf32>
    %191 = vector.broadcast %189 : vector<1x256xf32> to vector<4x256xf32>
    %192 = arith.mulf %190, %191 : vector<4x256xf32>
    %193 = arith.addf %180, %192 : vector<4x256xf32>
    %194 = vector.extract_strided_slice %187 {offsets = [0, 1], sizes = [4, 1], strides = [1, 1]} : vector<4x4xf32> to vector<4x1xf32>
    %195 = vector.extract_strided_slice %185 {offsets = [1, 0], sizes = [1, 256], strides = [1, 1]} : vector<4x256xf32> to vector<1x256xf32>
    %196 = vector.broadcast %194 : vector<4x1xf32> to vector<4x256xf32>
    %197 = vector.broadcast %195 : vector<1x256xf32> to vector<4x256xf32>
    %198 = arith.mulf %196, %197 : vector<4x256xf32>
    %199 = arith.addf %193, %198 : vector<4x256xf32>
    %200 = vector.extract_strided_slice %187 {offsets = [0, 2], sizes = [4, 1], strides = [1, 1]} : vector<4x4xf32> to vector<4x1xf32>
    %201 = vector.extract_strided_slice %185 {offsets = [2, 0], sizes = [1, 256], strides = [1, 1]} : vector<4x256xf32> to vector<1x256xf32>
    %202 = vector.broadcast %200 : vector<4x1xf32> to vector<4x256xf32>
    %203 = vector.broadcast %201 : vector<1x256xf32> to vector<4x256xf32>
    %204 = arith.mulf %202, %203 : vector<4x256xf32>
    %205 = arith.addf %199, %204 : vector<4x256xf32>
    %206 = vector.extract_strided_slice %187 {offsets = [0, 3], sizes = [4, 1], strides = [1, 1]} : vector<4x4xf32> to vector<4x1xf32>
    %207 = vector.extract_strided_slice %185 {offsets = [3, 0], sizes = [1, 256], strides = [1, 1]} : vector<4x256xf32> to vector<1x256xf32>
    %208 = vector.broadcast %206 : vector<4x1xf32> to vector<4x256xf32>
    %209 = vector.broadcast %207 : vector<1x256xf32> to vector<4x256xf32>
    %210 = arith.mulf %208, %209 : vector<4x256xf32>
    %211 = arith.addf %205, %210 : vector<4x256xf32>
    %c0_51 = arith.constant 0 : index
    %c0_52 = arith.constant 0 : index
    %c66 = arith.constant 66 : index
    %212 = vector.load %arg1[%c0_51, %c0_52, %c66] : memref<1x4x324xf32, #tpu.memory_space<vmem>>, vector<1x4x256xf32>
    %213 = vector.shape_cast %212 : vector<1x4x256xf32> to vector<4x256xf32>
    %c2_53 = arith.constant 2 : index
    %c1_54 = arith.constant 1 : index
    %c0_55 = arith.constant 0 : index
    %c0_56 = arith.constant 0 : index
    %214 = vector.load %arg2[%c2_53, %c1_54, %c0_55, %c0_56] : memref<3x3x4x4xf32, #tpu.memory_space<vmem>>, vector<1x1x4x4xf32>
    %215 = vector.shape_cast %214 : vector<1x1x4x4xf32> to vector<4x4xf32>
    %216 = vector.extract_strided_slice %215 {offsets = [0, 0], sizes = [4, 1], strides = [1, 1]} : vector<4x4xf32> to vector<4x1xf32>
    %217 = vector.extract_strided_slice %213 {offsets = [0, 0], sizes = [1, 256], strides = [1, 1]} : vector<4x256xf32> to vector<1x256xf32>
    %218 = vector.broadcast %216 : vector<4x1xf32> to vector<4x256xf32>
    %219 = vector.broadcast %217 : vector<1x256xf32> to vector<4x256xf32>
    %220 = arith.mulf %218, %219 : vector<4x256xf32>
    %221 = arith.addf %211, %220 : vector<4x256xf32>
    %222 = vector.extract_strided_slice %215 {offsets = [0, 1], sizes = [4, 1], strides = [1, 1]} : vector<4x4xf32> to vector<4x1xf32>
    %223 = vector.extract_strided_slice %213 {offsets = [1, 0], sizes = [1, 256], strides = [1, 1]} : vector<4x256xf32> to vector<1x256xf32>
    %224 = vector.broadcast %222 : vector<4x1xf32> to vector<4x256xf32>
    %225 = vector.broadcast %223 : vector<1x256xf32> to vector<4x256xf32>
    %226 = arith.mulf %224, %225 : vector<4x256xf32>
    %227 = arith.addf %221, %226 : vector<4x256xf32>
    %228 = vector.extract_strided_slice %215 {offsets = [0, 2], sizes = [4, 1], strides = [1, 1]} : vector<4x4xf32> to vector<4x1xf32>
    %229 = vector.extract_strided_slice %213 {offsets = [2, 0], sizes = [1, 256], strides = [1, 1]} : vector<4x256xf32> to vector<1x256xf32>
    %230 = vector.broadcast %228 : vector<4x1xf32> to vector<4x256xf32>
    %231 = vector.broadcast %229 : vector<1x256xf32> to vector<4x256xf32>
    %232 = arith.mulf %230, %231 : vector<4x256xf32>
    %233 = arith.addf %227, %232 : vector<4x256xf32>
    %234 = vector.extract_strided_slice %215 {offsets = [0, 3], sizes = [4, 1], strides = [1, 1]} : vector<4x4xf32> to vector<4x1xf32>
    %235 = vector.extract_strided_slice %213 {offsets = [3, 0], sizes = [1, 256], strides = [1, 1]} : vector<4x256xf32> to vector<1x256xf32>
    %236 = vector.broadcast %234 : vector<4x1xf32> to vector<4x256xf32>
    %237 = vector.broadcast %235 : vector<1x256xf32> to vector<4x256xf32>
    %238 = arith.mulf %236, %237 : vector<4x256xf32>
    %239 = arith.addf %233, %238 : vector<4x256xf32>
    %c0_57 = arith.constant 0 : index
    %c0_58 = arith.constant 0 : index
    %c68 = arith.constant 68 : index
    %240 = vector.load %arg1[%c0_57, %c0_58, %c68] : memref<1x4x324xf32, #tpu.memory_space<vmem>>, vector<1x4x256xf32>
    %241 = vector.shape_cast %240 : vector<1x4x256xf32> to vector<4x256xf32>
    %c0_59 = arith.constant 0 : index
    %c0_60 = arith.constant 0 : index
    %242 = vector.load %arg6[%c0_59, %c0_60] : memref<1x256xf32, #tpu.memory_space<vmem>>, vector<1x256xf32>
    %243 = vector.broadcast %242 : vector<1x256xf32> to vector<4x256xf32>
    %244 = arith.mulf %241, %243 : vector<4x256xf32>
    %c2_61 = arith.constant 2 : index
    %c2_62 = arith.constant 2 : index
    %c0_63 = arith.constant 0 : index
    %c0_64 = arith.constant 0 : index
    %245 = vector.load %arg2[%c2_61, %c2_62, %c0_63, %c0_64] : memref<3x3x4x4xf32, #tpu.memory_space<vmem>>, vector<1x1x4x4xf32>
    %246 = vector.shape_cast %245 : vector<1x1x4x4xf32> to vector<4x4xf32>
    %247 = vector.extract_strided_slice %246 {offsets = [0, 0], sizes = [4, 1], strides = [1, 1]} : vector<4x4xf32> to vector<4x1xf32>
    %248 = vector.extract_strided_slice %244 {offsets = [0, 0], sizes = [1, 256], strides = [1, 1]} : vector<4x256xf32> to vector<1x256xf32>
    %249 = vector.broadcast %247 : vector<4x1xf32> to vector<4x256xf32>
    %250 = vector.broadcast %248 : vector<1x256xf32> to vector<4x256xf32>
    %251 = arith.mulf %249, %250 : vector<4x256xf32>
    %252 = arith.addf %239, %251 : vector<4x256xf32>
    %253 = vector.extract_strided_slice %246 {offsets = [0, 1], sizes = [4, 1], strides = [1, 1]} : vector<4x4xf32> to vector<4x1xf32>
    %254 = vector.extract_strided_slice %244 {offsets = [1, 0], sizes = [1, 256], strides = [1, 1]} : vector<4x256xf32> to vector<1x256xf32>
    %255 = vector.broadcast %253 : vector<4x1xf32> to vector<4x256xf32>
    %256 = vector.broadcast %254 : vector<1x256xf32> to vector<4x256xf32>
    %257 = arith.mulf %255, %256 : vector<4x256xf32>
    %258 = arith.addf %252, %257 : vector<4x256xf32>
    %259 = vector.extract_strided_slice %246 {offsets = [0, 2], sizes = [4, 1], strides = [1, 1]} : vector<4x4xf32> to vector<4x1xf32>
    %260 = vector.extract_strided_slice %244 {offsets = [2, 0], sizes = [1, 256], strides = [1, 1]} : vector<4x256xf32> to vector<1x256xf32>
    %261 = vector.broadcast %259 : vector<4x1xf32> to vector<4x256xf32>
    %262 = vector.broadcast %260 : vector<1x256xf32> to vector<4x256xf32>
    %263 = arith.mulf %261, %262 : vector<4x256xf32>
    %264 = arith.addf %258, %263 : vector<4x256xf32>
    %265 = vector.extract_strided_slice %246 {offsets = [0, 3], sizes = [4, 1], strides = [1, 1]} : vector<4x4xf32> to vector<4x1xf32>
    %266 = vector.extract_strided_slice %244 {offsets = [3, 0], sizes = [1, 256], strides = [1, 1]} : vector<4x256xf32> to vector<1x256xf32>
    %267 = vector.broadcast %265 : vector<4x1xf32> to vector<4x256xf32>
    %268 = vector.broadcast %266 : vector<1x256xf32> to vector<4x256xf32>
    %269 = arith.mulf %267, %268 : vector<4x256xf32>
    %270 = arith.addf %264, %269 : vector<4x256xf32>
    %c0_65 = arith.constant 0 : index
    %c0_66 = arith.constant 0 : index
    %271 = vector.load %arg3[%c0_65, %c0_66] : memref<4x1xf32, #tpu.memory_space<vmem>>, vector<4x1xf32>
    %272 = vector.broadcast %271 : vector<4x1xf32> to vector<4x256xf32>
    %273 = arith.mulf %270, %272 : vector<4x256xf32>
    %c0_67 = arith.constant 0 : index
    %c0_68 = arith.constant 0 : index
    %274 = vector.load %arg4[%c0_67, %c0_68] : memref<4x1xf32, #tpu.memory_space<vmem>>, vector<4x1xf32>
    %275 = vector.broadcast %274 : vector<4x1xf32> to vector<4x256xf32>
    %276 = arith.addf %273, %275 : vector<4x256xf32>
    %cst_69 = arith.constant 0.000000e+00 : f32
    %277 = vector.broadcast %cst_69 : f32 to vector<4x256xf32>
    %278 = arith.maximumf %276, %277 : vector<4x256xf32>
    %c0_70 = arith.constant 0 : index
    %c0_71 = arith.constant 0 : index
    %c0_72 = arith.constant 0 : index
    %279 = vector.load %arg7[%c0_70, %c0_71, %c0_72] : memref<1x4x256xf32, #tpu.memory_space<vmem>>, vector<1x4x256xf32>
    %280 = vector.shape_cast %279 : vector<1x4x256xf32> to vector<4x256xf32>
    %281 = vector.shape_cast %278 : vector<4x256xf32> to vector<1x4x256xf32>
    tpu.vector_store %arg7[%c0_70, %c0_71, %c0_72], %281 {strides = array<i32>} : memref<1x4x256xf32, #tpu.memory_space<vmem>>, vector<1x4x256xf32>,
    return
  }
  func.func @transform_0(%arg0: i32) -> (i32, i32, i32) {
    %c0_i32 = arith.constant 0 : i32
    %c0_i32_0 = arith.constant 0 : i32
    %c0_i32_1 = arith.constant 0 : i32
    return %arg0, %c0_i32, %c0_i32_0 : i32, i32, i32
  }
  func.func @transform_1(%arg0: i32) -> (i32, i32, i32, i32) {
    %c0_i32 = arith.constant 0 : i32
    %c0_i32_0 = arith.constant 0 : i32
    %c0_i32_1 = arith.constant 0 : i32
    %c0_i32_2 = arith.constant 0 : i32
    %c0_i32_3 = arith.constant 0 : i32
    return %c0_i32, %c0_i32_0, %c0_i32_1, %c0_i32_2 : i32, i32, i32, i32
  }
  func.func @transform_2(%arg0: i32) -> (i32, i32) {
    %c0_i32 = arith.constant 0 : i32
    %c0_i32_0 = arith.constant 0 : i32
    %c0_i32_1 = arith.constant 0 : i32
    return %c0_i32, %c0_i32_0 : i32, i32
  }
  func.func @transform_3(%arg0: i32) -> (i32, i32) {
    %c0_i32 = arith.constant 0 : i32
    %c0_i32_0 = arith.constant 0 : i32
    %c0_i32_1 = arith.constant 0 : i32
    return %c0_i32, %c0_i32_0 : i32, i32
  }
  func.func @transform_4(%arg0: i32) -> (i32, i32) {
    %c0_i32 = arith.constant 0 : i32
    %c0_i32_0 = arith.constant 0 : i32
    %c0_i32_1 = arith.constant 0 : i32
    return %c0_i32, %c0_i32_0 : i32, i32
  }
  func.func @transform_5(%arg0: i32) -> (i32, i32) {
    %c0_i32 = arith.constant 0 : i32
    %c0_i32_0 = arith.constant 0 : i32
    %c0_i32_1 = arith.constant 0 : i32
    return %c0_i32, %c0_i32_0 : i32, i32
  }
  func.func @transform_6(%arg0: i32) -> (i32, i32, i32) {
    %c0_i32 = arith.constant 0 : i32
    %c0_i32_0 = arith.constant 0 : i32
    %c0_i32_1 = arith.constant 0 : i32
    return %arg0, %c0_i32, %c0_i32_0 : i32, i32, i32
  }
}

</mosaic_0001>

<bundles_post_ra>
// kernel: tpu_custom_call.1
= control target key start
LH: loop header
LB: loop body
LE: loop exit
PB: predicated region body
PF: predicated region fallthrough
CT: control target
= control target key end

     0   :  { %s3377_s0 = inlined_call_operand.hbm [shape: f32[2,4,324], index: 0, kind: input, shape index: {}]   ;;  %s3378_s1 = inlined_call_operand.hbm [shape: f32[3,3,4,4], index: 1, kind: input, shape index: {}]   ;;  %s3379_s2 = inlined_call_operand.vmem [shape: f32[4,1], index: 2, kind: input, shape index: {}]   ;;  %s3380_s3 = inlined_call_operand.vmem [shape: f32[4,1], index: 3, kind: input, shape index: {}]   ;;  %s3381_s4 = inlined_call_operand.vmem [shape: f32[1,256], index: 4, kind: input, shape index: {}]   ;;  %s3382_s5 = inlined_call_operand.vmem [shape: f32[1,256], index: 5, kind: input, shape index: {}]   ;;  %s3383_s6 = inlined_call_operand.hbm [shape: f32[2,4,256], index: 6, kind: output, shape index: {}]  }
   0x1   :  { %3392 = sst [smem:[#allocation11_spill]] %s3378_s1 }
   0x2   :  { %11 = vsyncpa [#allocation3], 0 }
   0x3   :  { %13 = vsyncpa [#allocation3 + $0x1], 0 }
   0x4   :  { %14 = vsyncpa [#allocation6], 0 }
   0x5   :  { %15 = vsyncpa [#allocation4], 0 }
   0x6   :  { %17 = vsyncpa [#allocation4 + $0x1], 0  ;;  %s2506_s21 = smov 0   ;;  %s2508_s22 = smov 0  }
   0x7   :  { %s2510_s23 = smov 0   ;;  %s2512_s24 = smov 0  }
   0x8 LB: > { %s2527_s25 = sadd.s32 4294967295, %s2448_s24   ;;  %s2203_s26 = sadd.s32 4294967294, %s2448_s24   ;;  %s2448_s24 = sphi %s2512_s24, %s3413_s24   ;;  %s2444_s23 = sphi %s2510_s23, %s3412_s23   ;;  %s2440_s22 = sphi %s2508_s22, %s3411_s22   ;;  %s2436_s21 = sphi %s2506_s21, %s3410_s21  }
   0x9   : > { %p43_p0 = scmp.ne.s32.totalorder %s2440_s22, %s2436_s21  ;;  %p3384_p1 = scmp.eq.s32.totalorder %s2527_s25, 0 }
   0xa   : > { %p178_p3 = scmp.eq.s32.totalorder %s2203_s26, 1  ;;  %p2204_p5 = scmp.ge.s32.totalorder %s2448_s24, 1 }
   0xb   : > { %p2536_p4 = por %p3384_p1, %p43_p0  ;;  %p185_p7 = scmp.lt.s32.totalorder %s2448_s24, 3 }
   0xc   : > { %p2541_p6 = por %p178_p3, %p43_p0  ;;  %s2450_s30 = smov [#allocation5]  }
   0xd   : > { %s3393_s27 = scalar_select %p2536_p4, 1, 0 }
   0xe   : > { %s3394_s28 = scalar_select %p2541_p6, 1, 0 }
   0xf   : > { %p2546_p8 = pnand %p2204_p5, %p185_p7  ;;  %s197_s7 = sshll.u32 %s2450_s30, 4  ;;  %s198_s7 = int_to_ptr.vmem [resolvable:$true] %s197_s7 }
  0x10   : > { %s2560_s9 = sadd.s32 1, %s2448_s24   ;;  %s30_s10 = sadd.s32 1, %s2444_s23 }
  0x11   : > { %s3395_s29 = scalar_select %p2546_p8, 1, 0 }
  0x12   : > { %p2228_p9 = pneg %p2546_p8  ;;  %s27_s11 = ssub.s32 %s2448_s24, %s2560_s9 }
  0x13   : > { %s2337_s12 = scalar_lea.vmem %s198_s7, 576  ;;  %p2345_p5 = scmp.lt.s32.totalorder %s198_s7, %s198_s7 }
  0x14   : > { %p2555_p11 = pnand %p2228_p9, %p3384_p1  ;;  %p2338_p13 = scmp.ne.s32.totalorder %s198_s7, %s2337_s12 }
  0x15   : > { %p2346_p7 = scmp.lt.s32.totalorder %s2337_s12, %s2337_s12 }
  0x16   : > { %p2328_p12 = pneg %p2555_p11 }
  0x17   : > { %p2347_p10 = por %p2346_p7, %p2345_p5 }
  0x18   : > { %p2340_p0 = pnand %p2338_p13, %p2328_p12 }
  0x1a   : > { %p2341_p3 = pneg %p2340_p0 }
  0x1c   : > { %p2348_p2 = pnand %p2347_p10, %p2341_p3 }
  0x1e   : > { %2351 = shalt.err (!%p2348_p2)
}
  0x1f   : > { %s2451_s13 = smov 64   ;;  %s2452_s14 = smov 4  }
  0x20   : > { %s3397_s1 = sld [smem:[#allocation11_spill]]  ;;  %p28_p9 = scmp.eq.s32.totalorder %s27_s11, 0 }
  0x21   : > { %p37_p12 = scmp.ne.s32.totalorder %s2444_s23, %s2440_s22  ;;  %p38_p10 = scmp.eq.s32.totalorder %s2448_s24, 0 }
  0x22   : > { %p2241_p2 = scmp.lt.s32.totalorder %s2448_s24, 2  ;;  %p3398_p0 = scmp.eq.s32.totalorder %s2527_s25, 1 }
  0x23   : > { %s2577_s17 = scalar_select %p28_p9, %s2444_s23, %s30_s10  }
  0x24   : > { %p39_p13 = por %p38_p10, %p37_p12  ;;  %p2581_p3 = por %p3398_p0, %p37_p12 }
  0x25   : > { %s223_s19 = sand.u32 1, %s2444_s23   ;;  %s2218_s20 = smul.u32 192, %s2448_s24 }
  0x26   : > { %2231 = dma.hbm_to_vmem [thread:$0]  (!%p2555_p11), %s3397_s1, 576, %s198_s7, [#allocation6], %s2451_s13, %s2451_s13, %s2452_s14  }
  0x27   : > { %s3399_s18 = scalar_select %p2581_p3, 1, 0 }
  0x28   : > { %s2217_s26 = smul.u32 12, %s223_s19  ;;  %p2587_p5 = pnand %p2241_p2, %p39_p13 }
  0x29   : > { %s2594_s11 = scalar_lea.hbm %s3377_s0, %s2218_s20  ;;  %s224_s13 = scalar_lea.sflag [#allocation3], %s223_s19 }
  0x2a   : > { %s227_s10 = scalar_lea.vmem [#allocation2], %s2217_s26  ;;  %s2352_s14 = scalar_lea.hbm %s2594_s11, 192 }
  0x2b   : > { %s235_s12 = sshll.u32 %s227_s10, 4  ;;  %p2353_p11 = scmp.ne.s32.totalorder %s2594_s11, %s2352_s14  ;;  %s236_s12 = int_to_ptr.vmem [resolvable:$true] %s235_s12 }
  0x2c   : > { %p2354_p7 = pneg %p2587_p5  ;;  %s2357_s7 = scalar_lea.hbm %s3377_s0, 384 }
  0x2d   : > { %p2358_p10 = scmp.lt.s32.totalorder %s2594_s11, %s3377_s0  ;;  %p2359_p2 = scmp.lt.s32.totalorder %s2357_s7, %s2352_s14 }
  0x2e   : > { %p2355_p9 = pnand %p2354_p7, %p2353_p11 }
  0x2f   : > { %p2360_p13 = por %p2359_p2, %p2358_p10 }
  0x30   : > { %p2356_p12 = pneg %p2355_p9 }
  0x32   : > { %p2361_p0 = pnand %p2360_p13, %p2356_p12 }
  0x34   : > { %2364 = shalt.err (!%p2361_p0)
}
  0x35   : > { %s2365_s26 = scalar_lea.vmem %s236_s12, 192  ;;  %s2453_s19 = smov [#allocation2]  }
  0x36   : > { %p2366_p1 = scmp.ne.s32.totalorder %s236_s12, %s2365_s26  ;;  %s2370_s10 = sshll.u32 %s2453_s19, 4  ;;  %s2371_s10 = int_to_ptr.vmem [resolvable:$false] %s2370_s10 }
  0x37   : > { %s2372_s1 = scalar_lea.vmem %s2371_s10, 384  ;;  %p2373_p11 = scmp.lt.s32.totalorder %s236_s12, %s2371_s10 }
  0x38   : > { %p2368_p6 = pnand %p2366_p1, %p2354_p7  ;;  %p2374_p9 = scmp.lt.s32.totalorder %s2372_s1, %s2365_s26 }
  0x3a   : > { %p2369_p3 = pneg %p2368_p6  ;;  %p2375_p4 = por %p2374_p9, %p2373_p11 }
  0x3c   : > { %p2376_p8 = pnand %p2375_p4, %p2369_p3 }
  0x3e   : > { %2379 = shalt.err (!%p2376_p8)
}
  0x3f   : > { %2235 = dma.hbm_to_vmem [thread:$0]  (!%p2587_p5), %s2594_s11, 192, %s236_s12, %s224_s13  }
  0x40   : > { %p3401_p12 = scmp.ne.s32.totalorder %s3395_s29, 0 }
  0x41   : > { %s2613_s14 = sand.u32 (!%p3401_p12), 1, %s2440_s22   ;;  %p3402_p1 = scmp.ne.s32.totalorder (!%p3401_p12), %s3393_s27, 0 }
  0x42   : > { %244 = sbr.rel (%p3401_p12) target bundleno = 847 (0x34f), region = 44  ;;  %s247_s16 = scalar_lea.sflag (!%p3401_p12), [#allocation3], %s2613_s14 }
  0x43   : > { %s2219_s15 = smul.u32 (!%p3401_p12), 12, %s2613_s14 }
  0x45   : > { %s2617_s7 = scalar_lea.vmem (!%p3401_p12), [#allocation2], %s2219_s15 }
  0x47   : > { %2423 = dma.done.wait (%p3402_p1), %s247_s16, 192  }
  0x48   : > { %2425 = vsyncadd (%p3402_p1), %s247_s16, 4294967104  ;;  %p3403_p4 = scmp.eq.s32.totalorder %s2527_s25, 0 }
  0x4a   : > { %2427 = dma.done.wait (%p3403_p4), [#allocation6], 576   ;;  %p3404_p6 = pmov %p3403_p4 }
  0x4b   : > { %v3388_v0 = vmov 2   ;;  %v2455_v1 = vmov 1   ;;  %v297_v2 = vld [vmem:[#allocation5] sm:$0xf]  ;;  %v842_v3 = vld [vmem:[#allocation5 + $0xc] sm:$0xf]  ;;  %v286_v7 = vlaneseq }
  0x4c   : > { %2429 = vsyncadd (%p3404_p6), [#allocation6], 4294966720  ;;  %2296 = vset.pattern.permute.xlu1 %v3388_v0  ;;  %2295 = vset.pattern.permute.xlu0 %v2455_v1  ;;  %v2456_v4 = vmov 3   ;;  %v407_v5 = vld [vmem:[#allocation5 + $0x4] sm:$0xf]  ;;  %v3390_v6 = vmov 0  }
  0x4d   : > { %353 = vperm.xlu1 %2296, %v297_v2   ;;  %327 = vperm.xlu0 %2295, %v297_v2   ;;  %v629_v8 = vld [vmem:[#allocation5 + $0x8] sm:$0xf]  ;;  %v2632_v9 = vshrl.u32 %v286_v7, 7  ;;  %s2458_s29 = smov 4   ;;  %s2459_s12 = smov 32   ;;  %vm622_vm0 = vcmask 31744  }
  0x4e   : > { %v608_v12 = vld [vmem:[%s3382_s5] sm:$0x3]  ;;  %v1046_v20 = vld [vmem:[#allocation5 + $0x10] sm:$0xf]  ;;  %s2460_s13 = smov 126   ;;  %s2461_s8 = smov 94  }
  0x4f   : > { %v2636_v10 = vsub.s32 0, %v2632_v9  ;;  %v2639_v11 = vsub.s32 1, %v2632_v9  ;;  %v284_v16 = vld [vmem:[%s3381_s4] sm:$0x3]  ;;  %v2670_v21 = vsub.s32 4, %v2632_v9  ;;  %v2687_v28 = vsub.s32 5, %v2632_v9 }
  0x50   : > { %v2675_v23 = vld [vmem:[%s2617_s7] sm:$0xff]  ;;  %v2682_v26 = vld [vmem:[%s2617_s7 + $0x8] sm:$0xf]  ;;  %v2700_v33 = vsub.s32 6, %v2632_v9  ;;  %v2715_v41 = vsub.s32 2, %v2632_v9  ;;  %v2723_v46 = vsub.s32 7, %v2632_v9 }
  0x51   : > { %2297 = vset.pattern.permute.xlu1 %v2456_v4  ;;  %897 = vperm.xlu0 %2295, %v842_v3   ;;  %v613_v13 = vrot.slane %v608_v12, %v2636_v10  ;;  %v617_v14 = vrot.slane %v608_v12, %v2639_v11  ;;  %v289_v17 = vrot.slane %v284_v16, %v2636_v10  ;;  %v2738_v53 = vsub.s32 3, %v2632_v9  ;;  %s2462_s20 = smov 96   ;;  %s2463_s26 = smov 124  }
  0x52   : > { %379 = vperm.xlu1 %2297, %v297_v2   ;;  %v293_v18 = vrot.slane %v284_v16, %v2639_v11  ;;  %v418_v24 = vrot.slane %v2675_v23, %v2636_v10  ;;  %v422_v25 = vrot.slane %v2675_v23, %v2670_v21  ;;  %v426_v31 = vrot.slane %v2682_v26, %v2636_v10  ;;  %s2464_s19 = smov 36   ;;  %s2465_s10 = smov 92  }
  0x53   : > { %v2648_v15 = vcombine.low %v613_v13, %v617_v14  ;;  %v472_v32 = vrot.slane %v2675_v23, %v2687_v28  ;;  %v468_v38 = vrot.slane %v2675_v23, %v2639_v11  ;;  %v521_v40 = vrot.slane %v2675_v23, %v2700_v33  ;;  %s2466_s15 = smov 64   ;;  %s2467_s16 = smov 68  }
  0x54   : > { %v2659_v19 = vcombine.low %v289_v17, %v293_v18  ;;  %v2690_v29 = vrot.slane %v418_v24, %v2636_v10  ;;  %v2693_v30 = vrot.slane %v422_v25, %v2636_v10  ;;  %v441_v37 = vrot.slane %v426_v31, %v2636_v10  ;;  %v2782_v25 = vld [vmem:[%s2617_s7 + $0x8] sm:$0xf]  ;;  %s2469_s1 = smov 60   ;;  %p3407_p3 = scmp.ne.s32.totalorder %s3399_s18, 0 }
  0x55   : > { %2305 = vset.pattern.permute.xlu0 %v3390_v6  ;;  %v2708_v39 = vrot.slane %v472_v32, %v2639_v11  ;;  %v2718_v44 = vrot.slane %v468_v38, %v2639_v11  ;;  %v476_v45 = vrot.slane %v2682_v26, %v2639_v11  ;;  %v2728_v48 = vrot.slane %v521_v40, %v2715_v41 }
  0x56   : > { %2298 = vset.pattern.permute.xlu1 %v3390_v6  ;;  %300 = vperm.xlu0 %2305, %v297_v2   ;;  %v570_v49 = vrot.slane %v2675_v23, %v2723_v46  ;;  %v517_v52 = vrot.slane %v2675_v23, %v2715_v41  ;;  %v525_v59 = vrot.slane %v2682_v26, %v2715_v41  ;;  %vm835_vm1 = vcmask 261120  }
  0x57   : > { %410 = vperm.xlu1 %2298, %v407_v5   ;;  %v491_v51 = vrot.slane %v476_v45, %v2639_v11  ;;  %v566_v2 = vrot.slane %v2675_v23, %v2738_v53  ;;  %v1065_v32 = vrot.slane %v2782_v25, %v2636_v10  ;;  %vm454_vm2 = vcmask 1031168  }
  0x58   : > { %v2743_v56 = vrot.slane %v570_v49, %v2738_v53  ;;  %v2747_v58 = vrot.slane %v517_v52, %v2715_v41  ;;  %v540_v63 = vrot.slane %v525_v59, %v2715_v41  ;;  %v1115_v52 = vrot.slane %v2782_v25, %v2639_v11 }
  0x59   : > { %v2760_v7 = vrot.slane %v566_v2, %v2738_v53  ;;  %vm676_vm3 = vcmask 1014784   ;;  %vm889_vm4 = vcmask 785408   ;;  %vm1093_vm5 = vcmask 769024  }
  0x5a   : > { %632 = vperm.xlu0 %2305, %v629_v8   ;;  %vm1250_vm6 = vcmask 293888   ;;  %vm1304_vm7 = vcmask 752640   ;;  %vm1463_vm8 = vcmask 523264   ;;  %vm1877_vm9 = vcmask 556032  }
  0x5b   : > { %2299 = vset.pattern.permute.xlu1 %v2455_v1  ;;  %vm1720_vm10 = vcmask 506880   ;;  %vm1931_vm11 = vcmask 490496  }
  0x5c   : > { %462 = vperm.xlu1 %2299, %v407_v5  }
  0x5e   : > { %845 = vperm.xlu0 %2305, %v842_v3  }
  0x60   : > { %2300 = vset.pattern.permute.xlu1 %v3388_v0 }
  0x61   : > { %511 = vperm.xlu1 %2300, %v407_v5  }
  0x65   : > { %2301 = vset.pattern.permute.xlu1 %v2456_v4 }
  0x66   : > { %560 = vperm.xlu1 %2301, %v407_v5  }
  0x6a   : > { %619 = vrot.lane.b32.xlu1 %v2648_v15, %s2458_s29 }
  0x6b   : > { %2302 = vset.pattern.permute.xlu1 %v2455_v1 }
  0x6e   : > { %684 = vperm.xlu1 %2302, %v629_v8  }
  0x72   : > { %2303 = vset.pattern.permute.xlu1 %v3388_v0 }
  0x73   : > { %733 = vperm.xlu1 %2303, %v629_v8  }
  0x77   : > { %2304 = vset.pattern.permute.xlu1 %v2456_v4 }
  0x78   : > { %782 = vperm.xlu1 %2304, %v629_v8   ;;  %v574_v8 = vrot.slane %v2682_v26, %v2738_v53 }
  0x7a   : > { %v589_v13 = vrot.slane %v574_v8, %v2738_v53  ;;  %v1164_v8 = vrot.slane %v2782_v25, %v2715_v41 }
  0x7c   : > { %832 = vrot.lane.b32.xlu1 %v2659_v19, %s2459_s12  ;;  %s2210_s12 = sshll.u32 %s2613_s14, 3 }
  0x7d   : > { %2306 = vset.pattern.permute.xlu1 %v3388_v0 }
  0x80   : > { %946 = vperm.xlu1 %2306, %v842_v3  }
  0x84   : > { %2307 = vset.pattern.permute.xlu1 %v2456_v4 }
  0x85   : > { %995 = vperm.xlu1 %2307, %v842_v3  }
  0x89   : > { %2308 = vset.pattern.permute.xlu1 %v3390_v6 }
  0x8a   : > { %1049 = vperm.xlu1 %2308, %v1046_v20  }
  0x8e   : > { %2309 = vset.pattern.permute.xlu1 %v2455_v1 }
  0x8f   : > { %1101 = vperm.xlu1 %2309, %v1046_v20  }
  0x93   : > { %2310 = vset.pattern.permute.xlu1 %v3388_v0 }
  0x94   : > { %1150 = vperm.xlu1 %2310, %v1046_v20  }
  0x98   : > { %2311 = vset.pattern.permute.xlu1 %v2456_v4 }
  0x99   : > { %1199 = vperm.xlu1 %2311, %v1046_v20  }
  0x9d   : > { %2312 = vset.pattern.permute.xlu1 %v2455_v1 }
  0xc8   : > { %v2672_v22 = vpop.permute.xlu1 %353  ;;  %v2779_v24 = vpop.permute.xlu0 %327 }
  0xcd   : > { %v2684_v27 = vpop.permute.xlu1 %379 }
  0xd2   : > { %v411_v34 = vpop.permute.xlu1 %410 }
  0xd3   : > { %v442_v35 = vmul.f32 %v2690_v29, %v411_v34  ;;  %v443_v36 = vmul.f32 %v2693_v30, %v411_v34  ;;  %v444_v43 = vmul.f32 %v441_v37, %v411_v34  ;;  %v2788_v34 = vpop.permute.xlu0 %897  ;;  %v831_v37 = vld [vmem:[%s2617_s7 + $0x8] sm:$0xf] }
  0xd5   : > { %448 = vrot.lane.b32.xlu0 %v442_v35, %s2460_s13  ;;  %450 = vrot.lane.b32.xlu1 %v443_v36, %s2460_s13 }
  0xd7   : > { %v463_v42 = vpop.permute.xlu1 %462 }
  0xd8   : > { %v493_v47 = vmul.f32 %v2708_v39, %v463_v42  ;;  %v492_v50 = vmul.f32 %v2718_v44, %v463_v42  ;;  %v494_v57 = vmul.f32 %v491_v51, %v463_v42 }
  0xd9   : > { %452 = vrot.lane.b32.xlu0 %v444_v43, %s2460_s13  ;;  %v1080_v43 = vrot.slane %v1065_v32, %v2636_v10 }
  0xda   : > { %500 = vrot.lane.b32.xlu1 %v493_v47, %s2460_s13  ;;  %v2799_v47 = vpop.permute.xlu0 %300 }
  0xdc   : > { %v512_v54 = vpop.permute.xlu1 %511 }
  0xdd   : > { %498 = vrot.lane.b32.xlu0 %v492_v50, %s2460_s13  ;;  %v542_v55 = vmul.f32 %v2728_v48, %v512_v54  ;;  %v541_v62 = vmul.f32 %v2747_v58, %v512_v54  ;;  %v543_v5 = vmul.f32 %v540_v63, %v512_v54 }
  0xde   : > { %v633_v59 = vpop.permute.xlu0 %632 }
  0xdf   : > { %549 = vrot.lane.b32.xlu1 %v542_v55, %s2460_s13 }
  0xe1   : > { %v561_v60 = vpop.permute.xlu1 %560  ;;  %502 = vrot.lane.b32.xlu0 %v494_v57, %s2460_s13 }
  0xe2   : > { %v591_v61 = vmul.f32 %v2743_v56, %v561_v60  ;;  %v590_v12 = vmul.f32 %v2760_v7, %v561_v60  ;;  %v592_v16 = vmul.f32 %v589_v13, %v561_v60  ;;  %v1130_v60 = vrot.slane %v1115_v52, %v2639_v11  ;;  %v2818_v2 = vpop.permute.xlu0 %845 }
  0xe4   : > { %598 = vrot.lane.b32.xlu1 %v591_v61, %s2460_s13 }
  0xe5   : > { %v620_v3 = vpop.permute.xlu1 %619  ;;  %547 = vrot.lane.b32.xlu0 %v541_v62, %s2460_s13 }
  0xe6   : > { %v621_v36 = vrot.slane %v620_v3, 4 }
  0xe8   : > { %v623_v49 = vsel %vm622_vm0, %v621_v36, %v620_v3  ;;  %v627_v3 = vmul.f32 %v621_v36, %v2682_v26  ;;  %v1179_v26 = vrot.slane %v1164_v8, %v2715_v41 }
  0xe9   : > { %v2764_v9 = vpop.permute.xlu1 %684  ;;  %551 = vrot.lane.b32.xlu0 %v543_v5, %s2460_s13 }
  0xea   : > { %v648_v36 = vrot.slane %v627_v3, %v2636_v10 }
  0xed   : > { %596 = vrot.lane.b32.xlu0 %v590_v12, %s2460_s13 }
  0xee   : > { %v2770_v14 = vpop.permute.xlu1 %733 }
  0xf1   : > { %600 = vrot.lane.b32.xlu0 %v592_v16, %s2460_s13  ;;  %s2216_s13 = sshll.u32 %s2527_s25, 7 }
  0xf3   : > { %v2773_v17 = vpop.permute.xlu1 %782 }
  0xf7   : > { %v2775_v18 = vpop.permute.xlu1 %832 }
  0xf8   : > { %v834_v35 = vrot.slane %v2775_v18, 4 }
  0xfa   : > { %v2795_v45 = vmul.f32 %v834_v35, %v831_v37 }
  0xfb   : > { %v2777_v20 = vpop.permute.xlu1 %946 }
  0xfc   : > { %v861_v57 = vrot.slane %v2795_v45, %v2636_v10 }
  0xfe   : > { %v876_v62 = vrot.slane %v861_v57, %v2636_v10 }
 0x100   : > { %v2784_v31 = vpop.permute.xlu1 %995  ;;  %v879_v12 = vmul.f32 %v876_v62, %v2818_v2 }
 0x105   : > { %v1050_v38 = vpop.permute.xlu1 %1049 }
 0x106   : > { %v1082_v40 = vmul.f32 %v1050_v38, %v2693_v30  ;;  %v1081_v42 = vmul.f32 %v1050_v38, %v2690_v29  ;;  %v1083_v51 = vmul.f32 %v1080_v43, %v1050_v38  ;;  %v2805_v29 = vmul.f32 %v623_v49, %v2675_v23 }
 0x107   : > { %v663_v43 = vrot.slane %v648_v36, %v2636_v10  ;;  %v698_v49 = vrot.slane %v627_v3, %v2639_v11 }
 0x108   : > { %1089 = vrot.lane.b32.xlu1 %v1082_v40, %s2461_s8  ;;  %1087 = vrot.lane.b32.xlu0 %v1081_v42, %s2461_s8  ;;  %v640_v63 = vrot.slane %v2805_v29, %v2636_v10  ;;  %v644_v32 = vrot.slane %v2805_v29, %v2670_v21  ;;  %v694_v40 = vrot.slane %v2805_v29, %v2687_v28 }
 0x109   : > { %v743_v52 = vrot.slane %v2805_v29, %v2700_v33  ;;  %v713_v57 = vrot.slane %v698_v49, %v2639_v11 }
 0x10a   : > { %v1102_v50 = vpop.permute.xlu1 %1101  ;;  %v655_v16 = vrot.slane %v640_v63, %v2636_v10  ;;  %v659_v38 = vrot.slane %v644_v32, %v2636_v10 }
 0x10b   : > { %v1132_v54 = vmul.f32 %v1102_v50, %v2708_v39  ;;  %v1131_v55 = vmul.f32 %v1102_v50, %v2718_v44  ;;  %v1133_v5 = vmul.f32 %v1130_v60, %v1102_v50  ;;  %v747_v60 = vrot.slane %v627_v3, %v2715_v41 }
 0x10c   : > { %1091 = vrot.lane.b32.xlu0 %v1083_v51, %s2461_s8  ;;  %v664_v37 = vmul.f32 %v655_v16, %v633_v59  ;;  %v665_v50 = vmul.f32 %v659_v38, %v633_v59  ;;  %v709_v51 = vrot.slane %v694_v40, %v2639_v11  ;;  %v758_v62 = vrot.slane %v743_v52, %v2715_v41 }
 0x10d   : > { %1139 = vrot.lane.b32.xlu1 %v1132_v54, %s2461_s8  ;;  %v836_v54 = vsel %vm835_vm1, %v834_v35, %v2775_v18  ;;  %v716_v18 = vmul.f32 %v713_v57, %v2764_v9  ;;  %v762_v35 = vrot.slane %v747_v60, %v2715_v41  ;;  %v911_v16 = vrot.slane %v2795_v45, %v2639_v11 }
 0x10e   : > { %v764_v63 = vmul.f32 %v758_v62, %v2770_v14  ;;  %v960_v40 = vrot.slane %v2795_v45, %v2715_v41  ;;  %v1009_v52 = vrot.slane %v2795_v45, %v2738_v53  ;;  %v690_v62 = vrot.slane %v2805_v29, %v2639_v11 }
 0x10f   : > { %v1151_v61 = vpop.permute.xlu1 %1150  ;;  %v926_v38 = vrot.slane %v911_v16, %v2639_v11 }
 0x110   : > { %1137 = vrot.lane.b32.xlu0 %v1131_v55, %s2461_s8  ;;  %v1181_v39 = vmul.f32 %v1151_v61, %v2728_v48  ;;  %v1180_v13 = vmul.f32 %v1151_v61, %v2747_v58  ;;  %v1182_v42 = vmul.f32 %v1179_v26, %v1151_v61  ;;  %v666_v55 = vmul.f32 %v663_v43, %v633_v59 }
 0x111   : > { %v2849_v61 = vmul.f32 %v836_v54, %v2675_v23  ;;  %v792_v59 = vrot.slane %v2805_v29, %v2723_v46 }
 0x112   : > { %1188 = vrot.lane.b32.xlu1 %v1181_v39, %s2461_s8  ;;  %v715_v39 = vmul.f32 %v709_v51, %v2764_v9  ;;  %v975_v51 = vrot.slane %v960_v40, %v2715_v41 }
 0x113   : > { %v853_v8 = vrot.slane %v2849_v61, %v2636_v10  ;;  %v903_v36 = vrot.slane %v2849_v61, %v2639_v11  ;;  %v907_v49 = vrot.slane %v2849_v61, %v2687_v28  ;;  %v956_v57 = vrot.slane %v2849_v61, %v2700_v33 }
 0x114   : > { %1141 = vrot.lane.b32.xlu0 %v1133_v5, %s2461_s8  ;;  %v796_v5 = vrot.slane %v627_v3, %v2738_v53  ;;  %v978_v60 = vmul.f32 %v975_v51, %v2777_v20 }
 0x115   : > { %v868_v3 = vrot.slane %v853_v8, %v2636_v10  ;;  %v918_v43 = vrot.slane %v903_v36, %v2639_v11  ;;  %v857_v36 = vrot.slane %v2849_v61, %v2670_v21 }
 0x116   : > { %887 = vrot.lane.b32.xlu1 %v879_v12, %s2462_s20  ;;  %v765_v12 = vmul.f32 %v762_v35, %v2770_v14  ;;  %v811_v26 = vrot.slane %v796_v5, %v2738_v53  ;;  %v1005_v35 = vrot.slane %v2849_v61, %v2723_v46  ;;  %v739_v5 = vrot.slane %v2805_v29, %v2715_v41 }
 0x117   : > { %v927_v54 = vmul.f32 %v918_v43, %v2788_v34  ;;  %v872_v40 = vrot.slane %v857_v36, %v2636_v10 }
 0x118   : > { %1186 = vrot.lane.b32.xlu0 %v1180_v13, %s2461_s8  ;;  %v807_v13 = vrot.slane %v792_v59, %v2738_v53 }
 0x11a   : > { %670 = vrot.lane.b32.xlu1 %v664_v37, %s2463_s26  ;;  %v813_v32 = vmul.f32 %v807_v13, %v2773_v17  ;;  %v814_v37 = vmul.f32 %v811_v26, %v2773_v17  ;;  %v754_v13 = vrot.slane %v739_v5, %v2715_v41  ;;  %v1200_v26 = vpop.permute.xlu1 %1199 }
 0x11c   : > { %1190 = vrot.lane.b32.xlu0 %v1182_v42, %s2461_s8  ;;  %v877_v42 = vmul.f32 %v868_v3, %v2818_v2  ;;  %v763_v3 = vmul.f32 %v754_v13, %v2770_v14  ;;  %v878_v14 = vmul.f32 %v872_v40, %v2818_v2 }
 0x11e   : > { %672 = vrot.lane.b32.xlu1 %v665_v50, %s2463_s26  ;;  %v929_v50 = vmul.f32 %v926_v38, %v2788_v34 }
 0x120   : > { %674 = vrot.lane.b32.xlu0 %v666_v55, %s2463_s26  ;;  %v922_v55 = vrot.slane %v907_v49, %v2639_v11 }
 0x122   : > { %722 = vrot.lane.b32.xlu1 %v715_v39, %s2463_s26  ;;  %v1024_v39 = vrot.slane %v1009_v52, %v2738_v53  ;;  %v928_v45 = vmul.f32 %v922_v55, %v2788_v34  ;;  %v1020_v34 = vrot.slane %v1005_v35, %v2738_v53  ;;  %v2954_v55 = vld [vmem:[#allocation5 + $0x14] sm:$0xf]  ;;  %v2970_v35 = vmul.f32 %v2659_v19, %v2675_v23 }
 0x124   : > { %724 = vrot.lane.b32.xlu0 %v716_v18, %s2463_s26  ;;  %v971_v18 = vrot.slane %v956_v57, %v2715_v41  ;;  %v1027_v59 = vmul.f32 %v1024_v39, %v2784_v31  ;;  %v1026_v16 = vmul.f32 %v1020_v34, %v2784_v31  ;;  %v337_v5 = vrot.slane %v2970_v35, %v2687_v28 }
 0x126   : > { %771 = vrot.lane.b32.xlu1 %v764_v63, %s2463_s26  ;;  %v705_v63 = vrot.slane %v690_v62, %v2639_v11  ;;  %v977_v8 = vmul.f32 %v971_v18, %v2777_v20  ;;  %v347_v13 = vrot.slane %v337_v5, %v2639_v11 }
 0x128   : > { %773 = vrot.lane.b32.xlu0 %v765_v12, %s2463_s26  ;;  %v714_v12 = vmul.f32 %v705_v63, %v2764_v9  ;;  %v349_v36 = vmul.f32 %v347_v13, %v2779_v24 }
 0x12a   : > { %820 = vrot.lane.b32.xlu1 %v813_v32, %s2463_s26  ;;  %v788_v32 = vrot.slane %v2805_v29, %v2738_v53  ;;  %v952_v29 = vrot.slane %v2849_v61, %v2715_v41 }
 0x12c   : > { %822 = vrot.lane.b32.xlu0 %v814_v37, %s2463_s26  ;;  %v1230_v37 = vmul.f32 %v1200_v26, %v2743_v56  ;;  %v803_v9 = vrot.slane %v788_v32, %v2738_v53  ;;  %v1001_v56 = vrot.slane %v2849_v61, %v2738_v53  ;;  %v1229_v61 = vmul.f32 %v1200_v26, %v2760_v7 }
 0x12d   : > { %v363_v32 = vrot.slane %v2970_v35, %v2700_v33 }
 0x12e   : > { %883 = vrot.lane.b32.xlu1 %v877_v42, %s2462_s20  ;;  %v812_v38 = vmul.f32 %v803_v9, %v2773_v17  ;;  %v967_v42 = vrot.slane %v952_v29, %v2715_v41  ;;  %v1016_v43 = vrot.slane %v1001_v56, %v2738_v53 }
 0x12f   : > { %v373_v9 = vrot.slane %v363_v32, %v2715_v41 }
 0x130   : > { %937 = vrot.lane.b32.xlu0 %v929_v50, %s2462_s20  ;;  %v976_v17 = vmul.f32 %v967_v42, %v2777_v20  ;;  %v1025_v2 = vmul.f32 %v1016_v43, %v2784_v31  ;;  %v1213_v50 = vrot.slane %v2782_v25, %v2738_v53 }
 0x131   : > { %v375_v42 = vmul.f32 %v373_v9, %v2672_v22 }
 0x132   : > { %933 = vrot.lane.b32.xlu1 %v927_v54, %s2462_s20  ;;  %v1228_v52 = vrot.slane %v1213_v50, %v2738_v53 }
 0x134   : > { %986 = vrot.lane.b32.xlu0 %v978_v60, %s2462_s20  ;;  %v1231_v20 = vmul.f32 %v1228_v52, %v1200_v26 }
 0x136   : > { %935 = vrot.lane.b32.xlu1 %v928_v45, %s2462_s20 }
 0x138   : > { %1035 = vrot.lane.b32.xlu0 %v1027_v59, %s2462_s20 }
 0x13a   : > { %984 = vrot.lane.b32.xlu1 %v977_v8, %s2462_s20  ;;  %v311_v8 = vrot.slane %v2970_v35, %v2670_v21 }
 0x13c   : > { %720 = vrot.lane.b32.xlu0 %v714_v12, %s2463_s26 }
 0x13e   : > { %1033 = vrot.lane.b32.xlu1 %v1026_v16, %s2462_s20  ;;  %v321_v16 = vrot.slane %v311_v8, %v2636_v10 }
 0x140   : > { %769 = vrot.lane.b32.xlu0 %v763_v3, %s2463_s26 }
 0x142   : > { %1237 = vrot.lane.b32.xlu1 %v1230_v37, %s2461_s8  ;;  %v323_v37 = vmul.f32 %v321_v16, %v2799_v47 }
 0x144   : > { %818 = vrot.lane.b32.xlu0 %v812_v38, %s2463_s26  ;;  %v389_v38 = vrot.slane %v2970_v35, %v2723_v46  ;;  %v351_v29 = vadd.f32 %v349_v36, %v323_v37  ;;  %v333_v36 = vrot.slane %v2970_v35, %v2639_v11  ;;  %v307_v37 = vrot.slane %v2970_v35, %v2636_v10 }
 0x146   : > { %1247 = vrot.lane.b32.xlu1 %v2648_v15, %s2464_s19  ;;  %v399_v56 = vrot.slane %v389_v38, %v2738_v53  ;;  %v377_v43 = vadd.f32 %v375_v42, %v351_v29 }
 0x147   : > { %v2941_v49 = vpop.permute.xlu0 %448  ;;  %v2960_v60 = vpop.permute.xlu1 %450 }
 0x148   : > { %885 = vrot.lane.b32.xlu0 %v878_v14, %s2462_s20  ;;  %v401_v50 = vmul.f32 %v399_v56, %v2684_v27  ;;  %v343_v56 = vrot.slane %v333_v36, %v2639_v11  ;;  %v385_v36 = vrot.slane %v2970_v35, %v2738_v53 }
 0x14b   : > { %v453_v51 = vpop.permute.xlu0 %452 }
 0x14c   : > { %982 = vrot.lane.b32.xlu0 %v976_v17, %s2462_s20  ;;  %v2962_v62 = vpop.permute.xlu1 %500  ;;  %v456_v52 = vsel %vm454_vm2, %v2960_v60, %v453_v51 }
 0x14f   : > { %v2951_v54 = vpop.permute.xlu0 %498 }
 0x150   : > { %1031 = vrot.lane.b32.xlu0 %v1025_v2, %s2462_s20 }
 0x151   : > { %v2966_v18 = vpop.permute.xlu1 %549 }
 0x153   : > { %v503_v31 = vpop.permute.xlu0 %502 }
 0x154   : > { %1235 = vrot.lane.b32.xlu0 %v1229_v61, %s2461_s8  ;;  %v505_v8 = vsel %vm454_vm2, %v2962_v62, %v503_v31 }
 0x156   : > { %v2972_v63 = vpop.permute.xlu1 %598 }
 0x157   : > { %v2958_v57 = vpop.permute.xlu0 %547 }
 0x158   : > { %1239 = vrot.lane.b32.xlu0 %v1231_v20, %s2461_s8  ;;  %v403_v20 = vadd.f32 %v401_v50, %v377_v43  ;;  %s282_s8 = scalar_lea.vmem [#allocation7], %s2210_s12 }
 0x159   : > { %s2123_s20 = sshll.u32 %s282_s8, 4  ;;  %s2124_s20 = int_to_ptr.vmem [resolvable:$true] %s2123_s20 }
 0x15a   : > { %v460_v13 = vadd.f32 %v456_v52, %v403_v20  ;;  %v359_v52 = vrot.slane %v2970_v35, %v2715_v41  ;;  %v455_v35 = vsel %vm454_vm2, %v2941_v49, %v2960_v60 }
 0x15b   : > { %v552_v39 = vpop.permute.xlu0 %551 }
 0x15c   : > { %1260 = vperm.xlu0 %2305, %v2954_v55   ;;  %v554_v32 = vsel %vm454_vm2, %v2966_v18, %v552_v39  ;;  %v509_v9 = vadd.f32 %v505_v8, %v460_v13  ;;  %v317_v39 = vrot.slane %v307_v37, %v2636_v10 }
 0x15e   : > { %v558_v29 = vadd.f32 %v554_v32, %v509_v9  ;;  %v322_v32 = vmul.f32 %v317_v39, %v2799_v47 }
 0x15f   : > { %v2964_v45 = vpop.permute.xlu0 %596 }
 0x160   : > { %2313 = vset.pattern.permute.xlu0 %v3388_v0 }
 0x163   : > { %v601_v59 = vpop.permute.xlu0 %600 }
 0x164   : > { %v603_v51 = vsel %vm454_vm2, %v2972_v63, %v601_v59  ;;  %v348_v59 = vmul.f32 %v343_v56, %v2779_v24 }
 0x165   : > { %v607_v43 = vadd.f32 %v603_v51, %v558_v29 }
 0x166   : > { %v350_v29 = vadd.f32 %v348_v59, %v322_v32 }
 0x17a   : > { %v2978_v34 = vpop.permute.xlu0 %1087  ;;  %v2980_v12 = vpop.permute.xlu1 %1089 }
 0x17e   : > { %v2986_v26 = vpop.permute.xlu0 %1091 }
 0x17f   : > { %v2988_v3 = vpop.permute.xlu1 %1139 }
 0x182   : > { %v2995_v40 = vpop.permute.xlu0 %1137 }
 0x184   : > { %v2997_v14 = vpop.permute.xlu1 %1188 }
 0x186   : > { %v3001_v17 = vpop.permute.xlu0 %1141 }
 0x188   : > { %v3003_v2 = vpop.permute.xlu1 %887 }
 0x18a   : > { %v3006_v61 = vpop.permute.xlu0 %1186 }
 0x18c   : > { %v671_v5 = vpop.permute.xlu1 %670 }
 0x18e   : > { %v3012_v16 = vpop.permute.xlu0 %1190 }
 0x190   : > { %v673_v38 = vpop.permute.xlu1 %672 }
 0x192   : > { %v675_v31 = vpop.permute.xlu0 %674 }
 0x193   : > { %v678_v42 = vsel %vm676_vm3, %v673_v38, %v675_v31  ;;  %v369_v31 = vrot.slane %v359_v52, %v2715_v41 }
 0x194   : > { %v723_v50 = vpop.permute.xlu1 %722  ;;  %v682_v20 = vadd.f32 %v678_v42, %v607_v43 }
 0x195   : > { %v374_v43 = vmul.f32 %v369_v31, %v2672_v22  ;;  %v504_v22 = vsel %vm454_vm2, %v2951_v54, %v2962_v62  ;;  %v677_v54 = vsel %vm676_vm3, %v671_v5, %v673_v38 }
 0x196   : > { %v725_v8 = vpop.permute.xlu0 %724 }
 0x197   : > { %v727_v13 = vsel %vm676_vm3, %v723_v50, %v725_v8  ;;  %v395_v8 = vrot.slane %v385_v36, %v2738_v53  ;;  %v376_v56 = vadd.f32 %v374_v43, %v350_v29 }
 0x198   : > { %v731_v9 = vadd.f32 %v727_v13, %v682_v20  ;;  %v772_v0 = vpop.permute.xlu1 %771 }
 0x199   : > { %v400_v52 = vmul.f32 %v395_v8, %v2684_v27 }
 0x19a   : > { %v774_v37 = vpop.permute.xlu0 %773 }
 0x19b   : > { %v776_v51 = vsel %vm676_vm3, %v772_v0, %v774_v37  ;;  %v402_v59 = vadd.f32 %v400_v52, %v376_v56  ;;  %v602_v37 = vsel %vm454_vm2, %v2964_v45, %v2972_v63 }
 0x19c   : > { %v780_v6 = vadd.f32 %v776_v51, %v731_v9  ;;  %v821_v42 = vpop.permute.xlu1 %820 }
 0x19d   : > { %v459_v9 = vadd.f32 %v455_v35, %v402_v59 }
 0x19e   : > { %v823_v24 = vpop.permute.xlu0 %822 }
 0x19f   : > { %v825_v47 = vsel %vm676_vm3, %v821_v42, %v823_v24  ;;  %v508_v36 = vadd.f32 %v504_v22, %v459_v9 }
 0x1a0   : > { %v829_v39 = vadd.f32 %v825_v47, %v780_v6  ;;  %v884_v20 = vpop.permute.xlu1 %883  ;;  %v553_v6 = vsel %vm454_vm2, %v2958_v57, %v2966_v18 }
 0x1a1   : > { %v557_v51 = vadd.f32 %v553_v6, %v508_v36 }
 0x1a2   : > { %v938_v13 = vpop.permute.xlu0 %937 }
 0x1a3   : > { %v606_v62 = vadd.f32 %v602_v37, %v557_v51 }
 0x1a4   : > { %v934_v32 = vpop.permute.xlu1 %933 }
 0x1a5   : > { %v681_v24 = vadd.f32 %v677_v54, %v606_v62 }
 0x1a6   : > { %v987_v31 = vpop.permute.xlu0 %986 }
 0x1a8   : > { %v936_v27 = vpop.permute.xlu1 %935 }
 0x1a9   : > { %v939_v49 = vsel %vm889_vm4, %v934_v32, %v936_v27  ;;  %v940_v60 = vsel %vm889_vm4, %v936_v27, %v938_v13 }
 0x1aa   : > { %v1036_v29 = vpop.permute.xlu0 %1035 }
 0x1ac   : > { %v985_v43 = vpop.permute.xlu1 %984 }
 0x1ad   : > { %v989_v8 = vsel %vm889_vm4, %v985_v43, %v987_v31 }
 0x1ae   : > { %v721_v57 = vpop.permute.xlu0 %720 }
 0x1af   : > { %v726_v18 = vsel %vm676_vm3, %v721_v57, %v723_v50  ;;  %v1193_v57 = vsel %vm1093_vm5, %v2997_v14, %v3012_v16 }
 0x1b0   : > { %v730_v47 = vadd.f32 %v726_v18, %v681_v24  ;;  %v1034_v56 = vpop.permute.xlu1 %1033 }
 0x1b1   : > { %v1038_v45 = vsel %vm889_vm4, %v1034_v56, %v1036_v29 }
 0x1b2   : > { %v770_v63 = vpop.permute.xlu0 %769 }
 0x1b3   : > { %v775_v52 = vsel %vm676_vm3, %v770_v63, %v772_v0 }
 0x1b4   : > { %v779_v13 = vadd.f32 %v775_v52, %v730_v47  ;;  %v1238_v51 = vpop.permute.xlu1 %1237 }
 0x1b6   : > { %v819_v35 = vpop.permute.xlu0 %818 }
 0x1b7   : > { %v824_v59 = vsel %vm676_vm3, %v819_v35, %v821_v42 }
 0x1b8   : > { %v828_v5 = vadd.f32 %v824_v59, %v779_v13 }
 0x1ba   : > { %v886_v38 = vpop.permute.xlu0 %885 }
 0x1bb   : > { %v890_v32 = vsel %vm889_vm4, %v884_v20, %v886_v38  ;;  %v891_v22 = vsel %vm889_vm4, %v886_v38, %v3003_v2  ;;  %v1095_v20 = vsel %vm1093_vm5, %v2980_v12, %v2986_v26  ;;  %v1143_v26 = vsel %vm1093_vm5, %v2995_v40, %v2988_v3 }
 0x1bc   : > { %v894_v9 = vadd.f32 %v890_v32, %v828_v5  ;;  %v895_v50 = vadd.f32 %v891_v22, %v829_v39  ;;  %v1248_v39 = vpop.permute.xlu1 %1247 }
 0x1bd   : > { %v1249_v47 = vrot.slane %v1248_v39, 4 }
 0x1be   : > { %v944_v31 = vadd.f32 %v940_v60, %v895_v50  ;;  %v983_v6 = vpop.permute.xlu0 %982  ;;  %v943_v36 = vadd.f32 %v939_v49, %v894_v9  ;;  %v1094_v49 = vsel %vm1093_vm5, %v2978_v34, %v2980_v12  ;;  %v1144_v60 = vsel %vm1093_vm5, %v2988_v3, %v3001_v17  ;;  %v1673_v50 = vld [vmem:[#allocation5 + $0x1c] sm:$0xf] }
 0x1bf   : > { %v988_v27 = vsel %vm889_vm4, %v983_v6, %v985_v43  ;;  %v1192_v12 = vsel %vm1093_vm5, %v3006_v61, %v2997_v14  ;;  %v1251_v52 = vsel %vm1250_vm6, %v1249_v47, %v1248_v39  ;;  %v3084_v13 = vmul.f32 %v1249_v47, %v2782_v25  ;;  %v1884_v6 = vld [vmem:[#allocation5 + $0x20] sm:$0xf] }
 0x1c0   : > { %v993_v37 = vadd.f32 %v989_v8, %v944_v31  ;;  %v992_v0 = vadd.f32 %v988_v27, %v943_v36  ;;  %v3087_v16 = vmul.f32 %v1251_v52, %v2675_v23  ;;  %v1470_v31 = vld [vmem:[#allocation5 + $0x18] sm:$0xf]  ;;  %v3405_v36 = vmov 0  }
 0x1c1   : > { %v1276_v35 = vrot.slane %v3084_v13, %v2636_v10  ;;  %v3406_v27 = vmov 2  }
 0x1c2   : > { %v1042_v29 = vadd.f32 %v1038_v45, %v993_v37  ;;  %v1032_v42 = vpop.permute.xlu0 %1031  ;;  %v1268_v59 = vrot.slane %v3087_v16, %v2636_v10  ;;  %v1272_v61 = vrot.slane %v3087_v16, %v2670_v21 }
 0x1c3   : > { %v1037_v54 = vsel %vm889_vm4, %v1032_v42, %v1034_v56  ;;  %v1291_v14 = vrot.slane %v1276_v35, %v2636_v10 }
 0x1c4   : > { %v1041_v2 = vadd.f32 %v1037_v54, %v992_v0  ;;  %v1099_v62 = vadd.f32 %v1095_v20, %v1042_v29  ;;  %v1283_v5 = vrot.slane %v1268_v59, %v2636_v10  ;;  %v1287_v22 = vrot.slane %v1272_v61, %v2636_v10 }
 0x1c5   : > { %v1326_v29 = vrot.slane %v3084_v13, %v2639_v11  ;;  %v1371_v20 = vrot.slane %v3087_v16, %v2700_v33  ;;  %v1322_v54 = vrot.slane %v3087_v16, %v2687_v28 }
 0x1c6   : > { %v1098_v43 = vadd.f32 %v1094_v49, %v1041_v2  ;;  %v1236_v8 = vpop.permute.xlu0 %1235  ;;  %v1148_v24 = vadd.f32 %v1144_v60, %v1099_v62 }
 0x1c7   : > { %v1241_v18 = vsel %vm1093_vm5, %v1236_v8, %v1238_v51  ;;  %v1341_v62 = vrot.slane %v1326_v29, %v2639_v11  ;;  %v1367_v8 = vrot.slane %v3087_v16, %v2715_v41 }
 0x1c8   : > { %v1147_v56 = vadd.f32 %v1143_v26, %v1098_v43  ;;  %v1197_v34 = vadd.f32 %v1193_v57, %v1148_v24  ;;  %v1386_v24 = vrot.slane %v1371_v20, %v2715_v41  ;;  %v1337_v26 = vrot.slane %v1322_v54, %v2639_v11 }
 0x1c9   : > { %v1416_v57 = vrot.slane %v3087_v16, %v2738_v53 }
 0x1ca   : > { %v1196_v17 = vadd.f32 %v1192_v12, %v1147_v56  ;;  %v1240_v45 = vpop.permute.xlu0 %1239 }
 0x1cb   : > { %v1242_v63 = vsel %vm1093_vm5, %v1238_v51, %v1240_v45  ;;  %v1382_v45 = vrot.slane %v1367_v8, %v2715_v41  ;;  %v1431_v52 = vrot.slane %v1416_v57, %v2738_v53 }
 0x1cc   : > { %v1245_v3 = vadd.f32 %v1241_v18, %v1196_v17  ;;  %v1246_v40 = vadd.f32 %v1242_v63, %v1197_v34  ;;  %v1375_v17 = vrot.slane %v3084_v13, %v2715_v41 }
 0x1d7   : > { %v1261_v38 = vpop.permute.xlu0 %1260 }
 0x1d8   : > { %v1292_v32 = vmul.f32 %v1283_v5, %v1261_v38  ;;  %v1294_v25 = vmul.f32 %v1291_v14, %v1261_v38  ;;  %v1293_v9 = vmul.f32 %v1287_v22, %v1261_v38  ;;  %v1390_v5 = vrot.slane %v1375_v17, %v2715_v41  ;;  %v1459_v38 = vld [vmem:[%s2617_s7 + $0x8] sm:$0xf] }
 0x1da   : > { %1302 = vrot.lane.b32.xlu0 %v1294_v25, %s2465_s10  ;;  %1298 = vrot.lane.b32.xlu1 %v1292_v32, %s2465_s10  ;;  %v1420_v32 = vrot.slane %v3087_v16, %v2723_v46 }
 0x1de   : > { %1361 = vperm.xlu0 %2313, %v2954_v55   ;;  %1300 = vrot.lane.b32.xlu1 %v1293_v9, %s2465_s10 }
 0x1e2   : > { %1777 = vperm.xlu0 %2313, %v1673_v50   ;;  %1312 = vperm.xlu1 %2312, %v2954_v55  }
 0x1e6   : > { %2319 = vset.pattern.permute.xlu0 %v2456_v4  ;;  %1460 = vrot.lane.b32.xlu1 %v2659_v19, %s2466_s15 }
 0x1e7   : > { %1622 = vperm.xlu0 %2319, %v1470_v31   ;;  %2314 = vset.pattern.permute.xlu1 %v2456_v4 }
 0x1ea   : > { %1410 = vperm.xlu1 %2314, %v2954_v55  }
 0x1eb   : > { %2037 = vperm.xlu0 %2319, %v1884_v6  }
 0x1ee   : > { %2315 = vset.pattern.permute.xlu1 %v2455_v1 }
 0x1ef   : > { %2323 = vset.pattern.permute.xlu0 %v3405_v36  ;;  %1524 = vperm.xlu1 %2315, %v1470_v31  }
 0x1f0   : > { %1473 = vperm.xlu0 %2323, %v1470_v31  }
 0x1f3   : > { %2316 = vset.pattern.permute.xlu1 %v3406_v27 }
 0x1f4   : > { %1573 = vperm.xlu1 %2316, %v1470_v31   ;;  %1887 = vperm.xlu0 %2323, %v1884_v6  }
 0x1f8   : > { %2317 = vset.pattern.permute.xlu1 %v3405_v36 }
 0x1f9   : > { %1676 = vperm.xlu1 %2317, %v1673_v50  }
 0x1fd   : > { %2318 = vset.pattern.permute.xlu1 %v2455_v1 }
 0x1fe   : > { %1728 = vperm.xlu1 %2318, %v1673_v50  }
 0x202   : > { %1874 = vrot.lane.b32.xlu1 %v2648_v15, %s2467_s16  ;;  %s2380_s16 = scalar_lea.vmem %s2124_s20, 128 }
 0x203   : > { %2320 = vset.pattern.permute.xlu1 %v2456_v4  ;;  %p2381_p8 = scmp.ne.s32.totalorder %s2124_s20, %s2380_s16 }
 0x205   : > { %p2382_p5 = pnand %p2381_p8, %p3407_p3 }
 0x206   : > { %1826 = vperm.xlu1 %2320, %v1673_v50  }
 0x207   : > { %p2383_p7 = pneg %p2382_p5 }
 0x20a   : > { %2321 = vset.pattern.permute.xlu1 %v2455_v1  ;;  %v1318_v1 = vrot.slane %v3087_v16, %v2639_v11  ;;  %v1435_v16 = vrot.slane %v1420_v32, %v2738_v53 }
 0x20b   : > { %1939 = vperm.xlu1 %2321, %v1884_v6  }
 0x20c   : > { %v1333_v2 = vrot.slane %v1318_v1, %v2639_v11 }
 0x20f   : > { %2322 = vset.pattern.permute.xlu1 %v3406_v27 }
 0x210   : > { %1988 = vperm.xlu1 %2322, %v1884_v6  }
 0x214   : > { %2324 = vset.pattern.permute.xlu1 %v3405_v36 }
 0x24c   : > { %v1299_v19 = vpop.permute.xlu1 %1298  ;;  %v1303_v55 = vpop.permute.xlu0 %1302 }
 0x250   : > { %v1301_v37 = vpop.permute.xlu1 %1300 }
 0x251   : > { %v1305_v0 = vsel %vm1304_vm7, %v1299_v19, %v1301_v37  ;;  %v1306_v51 = vsel %vm1304_vm7, %v1301_v37, %v1303_v55 }
 0x252   : > { %v3120_v15 = vadd.f32 %v1305_v0, %v1245_v3  ;;  %v3122_v4 = vadd.f32 %v1306_v51, %v1246_v40  ;;  %v1424_v3 = vrot.slane %v3084_v13, %v2738_v53 }
 0x254   : > { %v1439_v13 = vrot.slane %v1424_v3, %v2738_v53 }
 0x259   : > { %v1362_v42 = vpop.permute.xlu0 %1361 }
 0x25a   : > { %v1392_v47 = vmul.f32 %v1386_v24, %v1362_v42  ;;  %v1391_v35 = vmul.f32 %v1382_v45, %v1362_v42  ;;  %v1393_v25 = vmul.f32 %v1390_v5, %v1362_v42  ;;  %v2325_v5 = vld [vmem:[%s2617_s7] sm:$0xff] }
 0x25d   : > { %v1313_v39 = vpop.permute.xlu1 %1312  ;;  %v3134_v49 = vpop.permute.xlu0 %1777 }
 0x25e   : > { %v1342_v60 = vmul.f32 %v1333_v2, %v1313_v39  ;;  %v1344_v43 = vmul.f32 %v1341_v62, %v1313_v39  ;;  %v1343_v56 = vmul.f32 %v1337_v26, %v1313_v39 }
 0x260   : > { %1352 = vrot.lane.b32.xlu0 %v1344_v43, %s2465_s10  ;;  %1348 = vrot.lane.b32.xlu1 %v1342_v60, %s2465_s10 }
 0x261   : > { %v1461_v18 = vpop.permute.xlu1 %1460 }
 0x262   : > { %v1462_v34 = vrot.slane %v1461_v18, 4  ;;  %v3144_v12 = vpop.permute.xlu0 %1622 }
 0x264   : > { %v1464_v63 = vsel %vm1463_vm8, %v1462_v34, %v1461_v18  ;;  %1399 = vrot.lane.b32.xlu0 %v1392_v47, %s2465_s10  ;;  %1350 = vrot.lane.b32.xlu1 %v1343_v56, %s2465_s10  ;;  %v1468_v9 = vmul.f32 %v1462_v34, %v1459_v38  ;;  %v1684_v38 = vrot.slane %v2325_v5, %v2636_v10 }
 0x265   : > { %v1411_v40 = vpop.permute.xlu1 %1410  ;;  %v3156_v59 = vmul.f32 %v1464_v63, %v2675_v23 }
 0x266   : > { %v1440_v14 = vmul.f32 %v1431_v52, %v1411_v40  ;;  %v3158_v61 = vpop.permute.xlu0 %2037  ;;  %v1442_v50 = vmul.f32 %v1439_v13, %v1411_v40  ;;  %v1441_v27 = vmul.f32 %v1435_v16, %v1411_v40  ;;  %v1538_v55 = vrot.slane %v1468_v9, %v2639_v11 }
 0x267   : > { %v1481_v23 = vrot.slane %v3156_v59, %v2636_v10  ;;  %v1485_v22 = vrot.slane %v3156_v59, %v2670_v21  ;;  %v1530_v31 = vrot.slane %v3156_v59, %v2639_v11  ;;  %v1489_v1 = vrot.slane %v1468_v9, %v2636_v10 }
 0x268   : > { %1397 = vrot.lane.b32.xlu1 %v1391_v35, %s2465_s10  ;;  %1446 = vrot.lane.b32.xlu0 %v1440_v14, %s2465_s10  ;;  %v1534_v29 = vrot.slane %v3156_v59, %v2687_v28  ;;  %v1553_v20 = vrot.slane %v1538_v55, %v2639_v11  ;;  %v1583_v62 = vrot.slane %v3156_v59, %v2700_v33 }
 0x269   : > { %v1500_v36 = vrot.slane %v1485_v22, %v2636_v10  ;;  %v1496_v19 = vrot.slane %v1481_v23, %v2636_v10  ;;  %v1545_v37 = vrot.slane %v1530_v31, %v2639_v11  ;;  %v1504_v2 = vrot.slane %v1489_v1, %v2636_v10  ;;  %v1671_v23 = vld [vmem:[%s2617_s7 + $0x8] sm:$0xf]  ;;  %s2468_s7 = smov 62  }
 0x26a   : > { %v1525_v51 = vpop.permute.xlu1 %1524  ;;  %v1549_v39 = vrot.slane %v1534_v29, %v2639_v11  ;;  %v1628_v43 = vrot.slane %v3156_v59, %v2738_v53  ;;  %v1579_v24 = vrot.slane %v3156_v59, %v2715_v41  ;;  %v1598_v57 = vrot.slane %v1583_v62, %v2715_v41 }
 0x26b   : > { %v1474_v6 = vpop.permute.xlu0 %1473  ;;  %v1554_v54 = vmul.f32 %v1545_v37, %v1525_v51  ;;  %v1556_v8 = vmul.f32 %v1553_v20, %v1525_v51  ;;  %v1636_v47 = vrot.slane %v1468_v9, %v2738_v53  ;;  %v1587_v17 = vrot.slane %v1468_v9, %v2715_v41 }
 0x26c   : > { %1401 = vrot.lane.b32.xlu1 %v1393_v25, %s2465_s10  ;;  %1450 = vrot.lane.b32.xlu0 %v1442_v50, %s2465_s10  ;;  %v1506_v0 = vmul.f32 %v1500_v36, %v1474_v6  ;;  %v1505_v42 = vmul.f32 %v1496_v19, %v1474_v6  ;;  %v1507_v60 = vmul.f32 %v1504_v2, %v1474_v6 }
 0x26d   : > { %v1555_v18 = vmul.f32 %v1549_v39, %v1525_v51  ;;  %v1643_v56 = vrot.slane %v1628_v43, %v2738_v53  ;;  %v1594_v45 = vrot.slane %v1579_v24, %v2715_v41  ;;  %v1632_v52 = vrot.slane %v3156_v59, %v2723_v46 }
 0x26e   : > { %v1651_v40 = vrot.slane %v1636_v47, %v2738_v53  ;;  %v1602_v14 = vrot.slane %v1587_v17, %v2715_v41  ;;  %v1699_v22 = vrot.slane %v1684_v38, %v2636_v10  ;;  %v1742_v50 = vrot.slane %v1671_v23, %v2639_v11 }
 0x26f   : > { %v1574_v26 = vpop.permute.xlu1 %1573  ;;  %v1652_v35 = vmul.f32 %v1643_v56, %v3144_v12  ;;  %v1647_v32 = vrot.slane %v1632_v52, %v2738_v53  ;;  %v1692_v16 = vrot.slane %v1671_v23, %v2636_v10  ;;  %v1738_v36 = vrot.slane %v2325_v5, %v2687_v28 }
 0x270   : > { %1448 = vrot.lane.b32.xlu1 %v1441_v27, %s2465_s10  ;;  %1513 = vrot.lane.b32.xlu0 %v1506_v0, %s2466_s15  ;;  %v1604_v34 = vmul.f32 %v1598_v57, %v1574_v26  ;;  %v1603_v3 = vmul.f32 %v1594_v45, %v1574_v26  ;;  %v1605_v13 = vmul.f32 %v1602_v14, %v1574_v26  ;;  %s2121_s10 = scalar_lea.hbm %s3383_s6, %s2216_s13 }
 0x271   : > { %v1654_v25 = vmul.f32 %v1651_v40, %v3144_v12  ;;  %v1653_v31 = vmul.f32 %v1647_v32, %v3144_v12  ;;  %v1757_v27 = vrot.slane %v1742_v50, %v2639_v11  ;;  %v1753_v37 = vrot.slane %v1738_v36, %v2639_v11 }
 0x272   : > { %v1808_v20 = vmul.f32 %v3134_v49, %v2728_v48  ;;  %v1836_v2 = vrot.slane %v2325_v5, %v2723_v46 }
 0x274   : > { %1511 = vrot.lane.b32.xlu1 %v1505_v42, %s2466_s15  ;;  %1560 = vrot.lane.b32.xlu0 %v1554_v54, %s2466_s15  ;;  %v1677_v63 = vpop.permute.xlu1 %1676  ;;  %v1791_v42 = vrot.slane %v1671_v23, %v2715_v41  ;;  %v1851_v24 = vrot.slane %v1836_v2, %v2738_v53 }
 0x275   : > { %v1709_v9 = vmul.f32 %v1677_v63, %v2693_v30  ;;  %v1708_v6 = vmul.f32 %v1699_v22, %v1677_v63  ;;  %v1707_v30 = vrot.slane %v1692_v16, %v2636_v10  ;;  %v2085_v16 = vld [vmem:[%s3379_s2] sm:$0xf] }
 0x276   : > { %v1806_v43 = vrot.slane %v1791_v42, %v2715_v41 }
 0x277   : > { %v1710_v51 = vmul.f32 %v1707_v30, %v1677_v63 }
 0x278   : > { %1515 = vrot.lane.b32.xlu1 %v1507_v60, %s2466_s15  ;;  %1564 = vrot.lane.b32.xlu0 %v1556_v8, %s2466_s15  ;;  %v1807_v8 = vmul.f32 %v3134_v49, %v2747_v58  ;;  %v1809_v57 = vmul.f32 %v1806_v43, %v3134_v49 }
 0x279   : > { %v1729_v59 = vpop.permute.xlu1 %1728 }
 0x27a   : > { %v1758_v19 = vmul.f32 %v1729_v59, %v2718_v44  ;;  %v1760_v0 = vmul.f32 %v1757_v27, %v1729_v59  ;;  %v1759_v1 = vmul.f32 %v1753_v37, %v1729_v59  ;;  %v1840_v44 = vrot.slane %v1671_v23, %v2738_v53 }
 0x27c   : > { %1562 = vrot.lane.b32.xlu1 %v1555_v18, %s2466_s15  ;;  %1611 = vrot.lane.b32.xlu0 %v1604_v34, %s2466_s15  ;;  %v1855_v39 = vrot.slane %v1840_v44, %v2738_v53 }
 0x27d   : > { %v1875_v55 = vpop.permute.xlu1 %1874 }
 0x27e   : > { %v1876_v12 = vrot.slane %v1875_v55, 4 }
 0x280   : > { %1609 = vrot.lane.b32.xlu1 %v1603_v3, %s2466_s15  ;;  %1658 = vrot.lane.b32.xlu0 %v1652_v35, %s2466_s15  ;;  %v1878_v29 = vsel %vm1877_vm9, %v1876_v12, %v1875_v55 }
 0x281   : > { %v3239_v54 = vmul.f32 %v2325_v5, %v1878_v29  ;;  %v1827_v62 = vpop.permute.xlu1 %1826 }
 0x282   : > { %v1856_v60 = vmul.f32 %v1827_v62, %v2760_v7  ;;  %v1858_v26 = vmul.f32 %v1855_v39, %v1827_v62  ;;  %v1882_v7 = vmul.f32 %v1876_v12, %v1671_v23  ;;  %v1857_v56 = vmul.f32 %v1851_v24, %v1827_v62 }
 0x283   : > { %v1899_v48 = vrot.slane %v3239_v54, %v2670_v21  ;;  %v1895_v18 = vrot.slane %v3239_v54, %v2636_v10  ;;  %v1945_v47 = vrot.slane %v3239_v54, %v2639_v11  ;;  %v1888_v21 = vpop.permute.xlu0 %1887  ;;  %v1949_v52 = vrot.slane %v3239_v54, %v2687_v28 }
 0x284   : > { %1613 = vrot.lane.b32.xlu1 %v1605_v13, %s2466_s15  ;;  %1662 = vrot.lane.b32.xlu0 %v1654_v25, %s2466_s15  ;;  %v1903_v17 = vrot.slane %v1882_v7, %v2636_v10  ;;  %v1953_v49 = vrot.slane %v1882_v7, %v2639_v11  ;;  %v1998_v38 = vrot.slane %v3239_v54, %v2700_v33 }
 0x285   : > { %v1914_v58 = vrot.slane %v1899_v48, %v2636_v10  ;;  %v1910_v34 = vrot.slane %v1895_v18, %v2636_v10  ;;  %v1960_v45 = vrot.slane %v1945_v47, %v2639_v11  ;;  %v1964_v32 = vrot.slane %v1949_v52, %v2639_v11 }
 0x286   : > { %v1940_v3 = vpop.permute.xlu1 %1939  ;;  %v1918_v35 = vrot.slane %v1903_v17, %v2636_v10  ;;  %v1968_v14 = vrot.slane %v1953_v49, %v2639_v11  ;;  %v1994_v13 = vrot.slane %v3239_v54, %v2715_v41  ;;  %v2013_v59 = vrot.slane %v1998_v38, %v2715_v41 }
 0x287   : > { %v1920_v63 = vmul.f32 %v1914_v58, %v1888_v21  ;;  %v1919_v40 = vmul.f32 %v1910_v34, %v1888_v21  ;;  %v1969_v5 = vmul.f32 %v1960_v45, %v1940_v3  ;;  %v1970_v23 = vmul.f32 %v1964_v32, %v1940_v3 }
 0x288   : > { %1660 = vrot.lane.b32.xlu1 %v1653_v31, %s2466_s15  ;;  %1716 = vrot.lane.b32.xlu0 %v1709_v9, %s2468_s7  ;;  %v1921_v28 = vmul.f32 %v1918_v35, %v1888_v21  ;;  %v1971_v25 = vmul.f32 %v1968_v14, %v1940_v3  ;;  %v2002_v33 = vrot.slane %v1882_v7, %v2715_v41  ;;  %s2109_s15 = scalar_lea.sflag [#allocation4], %s2613_s14 }
 0x289   : > { %v2009_v22 = vrot.slane %v1994_v13, %v2715_v41  ;;  %v2051_v11 = vrot.slane %v1882_v7, %v2738_v53  ;;  %v2047_v55 = vrot.slane %v3239_v54, %v2723_v46  ;;  %v2093_v46 = vld [vmem:[%s3380_s3] sm:$0xf] }
 0x28a   : > { %v2017_v50 = vrot.slane %v2002_v33, %v2715_v41 }
 0x28b   : > { %v1989_v10 = vpop.permute.xlu1 %1988  ;;  %v2066_v36 = vrot.slane %v2051_v11, %v2738_v53  ;;  %v2062_v37 = vrot.slane %v2047_v55, %v2738_v53 }
 0x28c   : > { %1714 = vrot.lane.b32.xlu1 %v1708_v6, %s2468_s7  ;;  %1764 = vrot.lane.b32.xlu0 %v1758_v19, %s2468_s7  ;;  %v2019_v9 = vmul.f32 %v2013_v59, %v1989_v10  ;;  %v2018_v31 = vmul.f32 %v2009_v22, %v1989_v10  ;;  %v2043_v6 = vrot.slane %v3239_v54, %v2738_v53 }
 0x28d   : > { %v2020_v27 = vmul.f32 %v2017_v50, %v1989_v10  ;;  %v2069_v41 = vmul.f32 %v2066_v36, %v3158_v61  ;;  %v2068_v12 = vmul.f32 %v2062_v37, %v3158_v61 }
 0x28e   : > { %v2058_v19 = vrot.slane %v2043_v6, %v2738_v53 }
 0x290   : > { %1718 = vrot.lane.b32.xlu1 %v1710_v51, %s2468_s7  ;;  %1768 = vrot.lane.b32.xlu0 %v1760_v0, %s2468_s7  ;;  %v2067_v30 = vmul.f32 %v2058_v19, %v3158_v61 }
 0x294   : > { %1766 = vrot.lane.b32.xlu1 %v1759_v1, %s2468_s7  ;;  %1815 = vrot.lane.b32.xlu0 %v1808_v20, %s2468_s7 }
 0x298   : > { %1813 = vrot.lane.b32.xlu1 %v1807_v8, %s2468_s7  ;;  %1862 = vrot.lane.b32.xlu0 %v1856_v60, %s2468_s7 }
 0x29c   : > { %1817 = vrot.lane.b32.xlu1 %v1809_v57, %s2468_s7  ;;  %1866 = vrot.lane.b32.xlu0 %v1858_v26, %s2468_s7 }
 0x2a0   : > { %1864 = vrot.lane.b32.xlu1 %v1857_v56, %s2468_s7  ;;  %1927 = vrot.lane.b32.xlu0 %v1920_v63, %s2469_s1  ;;  %s2470_s7 = smov [#allocation7]  }
 0x2a4   : > { %1925 = vrot.lane.b32.xlu1 %v1919_v40, %s2469_s1  ;;  %1975 = vrot.lane.b32.xlu0 %v1969_v5, %s2469_s1 }
 0x2a8   : > { %1929 = vrot.lane.b32.xlu1 %v1921_v28, %s2469_s1  ;;  %1979 = vrot.lane.b32.xlu0 %v1971_v25, %s2469_s1 }
 0x2ac   : > { %1977 = vrot.lane.b32.xlu1 %v1970_v23, %s2469_s1  ;;  %2026 = vrot.lane.b32.xlu0 %v2019_v9, %s2469_s1 }
 0x2b0   : > { %2024 = vrot.lane.b32.xlu1 %v2018_v31, %s2469_s1  ;;  %2088 = vperm.xlu0 %2323, %v2085_v16  }
 0x2b4   : > { %2028 = vrot.lane.b32.xlu1 %v2020_v27, %s2469_s1  ;;  %2077 = vrot.lane.b32.xlu0 %v2069_v41, %s2469_s1 }
 0x2b8   : > { %2073 = vrot.lane.b32.xlu1 %v2067_v30, %s2469_s1 }
 0x2bc   : > { %2075 = vrot.lane.b32.xlu1 %v2068_v12, %s2469_s1  ;;  %s2384_s1 = sshll.u32 %s2470_s7, 4  ;;  %s2385_s1 = int_to_ptr.vmem [resolvable:$false] %s2384_s1 }
 0x2bd   : > { %s2386_s25 = scalar_lea.vmem %s2385_s1, 256  ;;  %p2387_p10 = scmp.lt.s32.totalorder %s2124_s20, %s2385_s1 }
 0x2be   : > { %p2388_p2 = scmp.lt.s32.totalorder %s2386_s25, %s2380_s16 }
 0x2c0   : > { %2096 = vperm.xlu1 %2324, %v2093_v46   ;;  %p2389_p13 = por %p2388_p2, %p2387_p10 }
 0x2c2   : > { %p2390_p0 = pnand %p2389_p13, %p2383_p7 }
 0x2d2   : > { %v1353_v0 = vpop.permute.xlu0 %1352  ;;  %v1349_v51 = vpop.permute.xlu1 %1348 }
 0x2d6   : > { %v1400_v1 = vpop.permute.xlu0 %1399  ;;  %v1351_v29 = vpop.permute.xlu1 %1350 }
 0x2d7   : > { %v1354_v44 = vsel %vm1304_vm7, %v1349_v51, %v1351_v29  ;;  %v1355_v5 = vsel %vm1304_vm7, %v1351_v29, %v1353_v0 }
 0x2d8   : > { %v1358_v42 = vadd.f32 %v1354_v44, %v3120_v15  ;;  %v1359_v13 = vadd.f32 %v1355_v5, %v3122_v4 }
 0x2da   : > { %v1447_v53 = vpop.permute.xlu0 %1446  ;;  %v1398_v20 = vpop.permute.xlu1 %1397 }
 0x2db   : > { %v1403_v38 = vsel %vm1304_vm7, %v1398_v20, %v1400_v1 }
 0x2dc   : > { %v1407_v10 = vadd.f32 %v1403_v38, %v1358_v42 }
 0x2de   : > { %v1402_v54 = vpop.permute.xlu1 %1401  ;;  %v1451_v2 = vpop.permute.xlu0 %1450 }
 0x2df   : > { %v1404_v32 = vsel %vm1304_vm7, %v1400_v1, %v1402_v54 }
 0x2e0   : > { %v1408_v23 = vadd.f32 %v1404_v32, %v1359_v13 }
 0x2e2   : > { %v1449_v61 = vpop.permute.xlu1 %1448  ;;  %v1514_v62 = vpop.permute.xlu0 %1513 }
 0x2e3   : > { %v1452_v25 = vsel %vm1304_vm7, %v1447_v53, %v1449_v61  ;;  %v1453_v59 = vsel %vm1304_vm7, %v1449_v61, %v1451_v2 }
 0x2e4   : > { %v1456_v11 = vadd.f32 %v1452_v25, %v1407_v10  ;;  %v1457_v50 = vadd.f32 %v1453_v59, %v1408_v23 }
 0x2e6   : > { %v1512_v39 = vpop.permute.xlu1 %1511  ;;  %v1561_v60 = vpop.permute.xlu0 %1560 }
 0x2e7   : > { %v1517_v22 = vsel %vm1463_vm8, %v1512_v39, %v1514_v62 }
 0x2e8   : > { %v1521_v4 = vadd.f32 %v1517_v22, %v1456_v11 }
 0x2ea   : > { %v1516_v43 = vpop.permute.xlu1 %1515  ;;  %v1565_v8 = vpop.permute.xlu0 %1564 }
 0x2eb   : > { %v1518_v9 = vsel %vm1463_vm8, %v1514_v62, %v1516_v43 }
 0x2ec   : > { %v1522_v36 = vadd.f32 %v1518_v9, %v1457_v50 }
 0x2ee   : > { %v1563_v48 = vpop.permute.xlu1 %1562  ;;  %v1612_v24 = vpop.permute.xlu0 %1611 }
 0x2ef   : > { %v1566_v16 = vsel %vm1463_vm8, %v1561_v60, %v1563_v48  ;;  %v1567_v6 = vsel %vm1463_vm8, %v1563_v48, %v1565_v8 }
 0x2f0   : > { %v1570_v55 = vadd.f32 %v1566_v16, %v1521_v4  ;;  %v1571_v41 = vadd.f32 %v1567_v6, %v1522_v36 }
 0x2f2   : > { %v1610_v26 = vpop.permute.xlu1 %1609  ;;  %v1659_v57 = vpop.permute.xlu0 %1658 }
 0x2f3   : > { %v1615_v27 = vsel %vm1463_vm8, %v1610_v26, %v1612_v24 }
 0x2f4   : > { %v1619_v0 = vadd.f32 %v1615_v27, %v1570_v55 }
 0x2f6   : > { %v1614_v7 = vpop.permute.xlu1 %1613  ;;  %v1663_v18 = vpop.permute.xlu0 %1662 }
 0x2f7   : > { %v1616_v19 = vsel %vm1463_vm8, %v1612_v24, %v1614_v7 }
 0x2f8   : > { %v1620_v51 = vadd.f32 %v1616_v19, %v1571_v41 }
 0x2fa   : > { %v1661_v47 = vpop.permute.xlu1 %1660  ;;  %v1717_v58 = vpop.permute.xlu0 %1716 }
 0x2fb   : > { %v1664_v12 = vsel %vm1463_vm8, %v1659_v57, %v1661_v47  ;;  %v1665_v46 = vsel %vm1463_vm8, %v1661_v47, %v1663_v18 }
 0x2fc   : > { %v1668_v44 = vadd.f32 %v1664_v12, %v1619_v0  ;;  %v1669_v42 = vadd.f32 %v1665_v46, %v1620_v51 }
 0x2fe   : > { %v1715_v56 = vpop.permute.xlu1 %1714  ;;  %v1765_v15 = vpop.permute.xlu0 %1764 }
 0x2ff   : > { %v1721_v1 = vsel %vm1720_vm10, %v1715_v56, %v1717_v58 }
 0x300   : > { %v1725_v2 = vadd.f32 %v1721_v1, %v1668_v44 }
 0x302   : > { %v1719_v21 = vpop.permute.xlu1 %1718  ;;  %v1769_v34 = vpop.permute.xlu0 %1768 }
 0x303   : > { %v1722_v29 = vsel %vm1720_vm10, %v1717_v58, %v1719_v21 }
 0x304   : > { %v1726_v61 = vadd.f32 %v1722_v29, %v1669_v42 }
 0x306   : > { %v1767_v17 = vpop.permute.xlu1 %1766  ;;  %v1816_v49 = vpop.permute.xlu0 %1815 }
 0x307   : > { %v1770_v20 = vsel %vm1720_vm10, %v1765_v15, %v1767_v17  ;;  %v1771_v54 = vsel %vm1720_vm10, %v1767_v17, %v1769_v34 }
 0x308   : > { %v1774_v43 = vadd.f32 %v1770_v20, %v1725_v2  ;;  %v1775_v8 = vadd.f32 %v1771_v54, %v1726_v61 }
 0x30a   : > { %v1814_v45 = vpop.permute.xlu1 %1813  ;;  %v1863_v63 = vpop.permute.xlu0 %1862 }
 0x30b   : > { %v1819_v39 = vsel %vm1720_vm10, %v1814_v45, %v1816_v49 }
 0x30c   : > { %v1823_v57 = vadd.f32 %v1819_v39, %v1774_v43 }
 0x30e   : > { %v1818_v52 = vpop.permute.xlu1 %1817  ;;  %v1867_v3 = vpop.permute.xlu0 %1866 }
 0x30f   : > { %v1820_v60 = vsel %vm1720_vm10, %v1816_v49, %v1818_v52 }
 0x310   : > { %v1824_v7 = vadd.f32 %v1820_v60, %v1775_v8 }
 0x312   : > { %v1865_v40 = vpop.permute.xlu1 %1864  ;;  %v1928_v35 = vpop.permute.xlu0 %1927 }
 0x313   : > { %v1868_v24 = vsel %vm1720_vm10, %v1863_v63, %v1865_v40  ;;  %v1869_v26 = vsel %vm1720_vm10, %v1865_v40, %v1867_v3 }
 0x314   : > { %v1872_v56 = vadd.f32 %v1868_v24, %v1823_v57  ;;  %v1873_v15 = vadd.f32 %v1869_v26, %v1824_v7 }
 0x316   : > { %v1926_v14 = vpop.permute.xlu1 %1925  ;;  %v1976_v33 = vpop.permute.xlu0 %1975 }
 0x317   : > { %v1932_v47 = vsel %vm1931_vm11, %v1926_v14, %v1928_v35 }
 0x318   : > { %v1936_v17 = vadd.f32 %v1932_v47, %v1872_v56 }
 0x31a   : > { %v1930_v28 = vpop.permute.xlu1 %1929  ;;  %v1980_v30 = vpop.permute.xlu0 %1979 }
 0x31b   : > { %v1933_v58 = vsel %vm1931_vm11, %v1928_v35, %v1930_v28 }
 0x31c   : > { %v1937_v49 = vadd.f32 %v1933_v58, %v1873_v15 }
 0x31e   : > { %v1978_v31 = vpop.permute.xlu1 %1977  ;;  %v2027_v62 = vpop.permute.xlu0 %2026 }
 0x31f   : > { %v1981_v21 = vsel %vm1931_vm11, %v1976_v33, %v1978_v31  ;;  %v1982_v34 = vsel %vm1931_vm11, %v1978_v31, %v1980_v30 }
 0x320   : > { %v1985_v40 = vadd.f32 %v1981_v21, %v1936_v17  ;;  %v1986_v14 = vadd.f32 %v1982_v34, %v1937_v49 }
 0x322   : > { %v2025_v37 = vpop.permute.xlu1 %2024 }
 0x323   : > { %v2030_v52 = vsel %vm1931_vm11, %v2025_v37, %v2027_v62 }
 0x324   : > { %v2034_v38 = vadd.f32 %v2030_v52, %v1985_v40 }
 0x326   : > { %v2029_v53 = vpop.permute.xlu1 %2028 }
 0x327   : > { %v2031_v3 = vsel %vm1931_vm11, %v2027_v62, %v2029_v53 }
 0x328   : > { %v2035_v32 = vadd.f32 %v2031_v3, %v1986_v14 }
 0x32a   : > { %v2074_v48 = vpop.permute.xlu1 %2073 }
 0x32b   : > { %v2089_v18 = vpop.permute.xlu0 %2088 }
 0x32e   : > { %v2076_v45 = vpop.permute.xlu1 %2075 }
 0x32f   : > { %v2078_v63 = vpop.permute.xlu0 %2077  ;;  %v2079_v35 = vsel %vm1931_vm11, %v2074_v48, %v2076_v45 }
 0x330   : > { %v2080_v5 = vsel %vm1931_vm11, %v2076_v45, %v2078_v63  ;;  %v2083_v13 = vadd.f32 %v2079_v35, %v2034_v38 }
 0x331   : > { %v2084_v28 = vadd.f32 %v2080_v5, %v2035_v32 }
 0x332   : > { %v2091_v25 = vmul.f32 %v2089_v18, %v2083_v13 }
 0x333   : > { %v2092_v59 = vmul.f32 %v2089_v18, %v2084_v28 }
 0x33b   : > { %v2097_v10 = vpop.permute.xlu1 %2096 }
 0x33c   : > { %v2099_v23 = vadd.f32 %v2097_v10, %v2091_v25  ;;  %v2100_v33 = vadd.f32 %v2097_v10, %v2092_v59 }
 0x33e   : > { %v2101_v22 = vmax.f32 %v2099_v23, 0.0  ;;  %v2102_v9 = vmax.f32 %v2100_v33, 0.0 }
 0x340   : > { %v2105_v11 = vcombine.low %v2101_v22, %v2102_v9 }
 0x342   : > { %2107 = vst [vmem:[%s282_s8] sm:$0xff] %v2105_v11 }
 0x343   : > { %2393 = shalt.err (!%p2390_p0)
}
 0x344   : > { %s2394_s27 = scalar_lea.hbm %s2121_s10, 128  ;;  %s2398_s30 = scalar_lea.hbm %s3383_s6, 256 }
 0x345   : > { %p2395_p11 = scmp.ne.s32.totalorder %s2121_s10, %s2394_s27  ;;  %p2399_p1 = scmp.lt.s32.totalorder %s2121_s10, %s3383_s6 }
 0x346   : > { %p2400_p4 = scmp.lt.s32.totalorder %s2398_s30, %s2394_s27 }
 0x347   : > { %p2396_p9 = pnand %p2395_p11, %p3407_p3 }
 0x348   : > { %p2401_p6 = por %p2400_p4, %p2399_p1 }
 0x349   : > { %p2397_p12 = pneg %p2396_p9 }
 0x34b   : > { %p2402_p8 = pnand %p2401_p6, %p2397_p12 }
 0x34d   : > { %2405 = shalt.err (!%p2402_p8)
}
 0x34e   : > { %2226 = dma.vmem_to_hbm [thread:$0]  (%p3407_p3), %s2124_s20, 128, %s2121_s10, %s2109_s15  }
 0x34f PF: > { %s2135_s13 = sand.u32 1, %s2436_s21   ;;  %p3408_p5 = scmp.ne.s32.totalorder %s3394_s28, 0 }
 0x350   : > { %p3409_p7 = scmp.ge.s32.totalorder %s2448_s24, 2  ;;  %s2136_s8 = scalar_lea.sflag [#allocation4], %s2135_s13 }
 0x352   : > { %p2237_p10 = pnand %p3409_p7, %p3408_p5 }
 0x354   : > { %p2238_p2 = pneg %p2237_p10 }
 0x356   : > { %2431 = dma.done.wait (%p2238_p2), %s2136_s8, 128  }
 0x357   : > { %2433 = vsyncadd (%p2238_p2), %s2136_s8, 4294967168  ;;  %p20_p13 = scmp.ge.s32.totalorder %s2560_s9, 4   ;;  %s3410_s21 = smov %s2440_s22 }
 0x358   : > { %s3411_s22 = smov %s2444_s23  ;;  %s3412_s23 = smov %s2577_s17 }
 0x359   : > { %s3413_s24 = smov %s2560_s9  ;;  %22 = sbr.rel (!%p20_p13) target bundleno = 8 (0x8), region = 101 }
 0x35e   :  { %2141 = vsyncpa [#allocation3], 1 }
 0x35f   :  { %2143 = vsyncpa [#allocation3 + $0x1], 1 }
 0x360   :  { %2144 = vsyncpa [#allocation6], 1 }
 0x361   :  { %2145 = vsyncpa [#allocation4], 1 }
 0x362   :  { %2147 = vsyncpa [#allocation4 + $0x1], 1 }

</bundles_post_ra>
